<compile_context>
chip_gen: v7x
topology: tpu7x:2x2x1
jax: 0.10.0
libtpu: 0.0.40
codegen_flags: <defaults>
</compile_context>

<pallas_src>
import functools

import jax
import jax.numpy as jnp
from jax.experimental import pallas as pl
from jax.experimental.pallas import tpu as pltpu


# ----------------------------------------------------------------------------
# Fused time-blocked RNN + last-hidden capture + classifier kernel
# ----------------------------------------------------------------------------
def _make_fused_rnn_kernel(num_layers, tt):
    """Fused kernel over `num_layers` tanh RNN layers, TT timesteps per grid step.

    Ref order (inputs):
      len_ref  : (B_pad, 1)      int32  lengths (sorted, padded, clamped >= 1)
      pre0_ref : (TT, B_pad, H)  f32    layer-0 pre-activation chunk (gather + bias0)
      whh0_ref : (H, H)          bf16   layer-0 W_hh^T
      then, per layer l >= 1:  w_cat^T (2H, H) bf16, bias (1, H) f32
      clsw_ref : (H, H)          bf16   classifier W^T
      clsb_ref : (1, H)          f32    classifier bias
    Outputs:
      out_ref  : (B_pad, H)      f32    classifier(last valid hidden)
    Scratch:
      h_ref    : (num_layers, B_pad, H) bf16  carried hidden states
      last_ref : (B_pad, H)             bf16  captured hidden at t = length-1
    """
    n_extra = num_layers - 1

    def kernel(*refs):
        len_ref, pre0_ref, whh0_ref = refs[:3]
        layer_refs = refs[3:3 + 2 * n_extra]
        clsw_ref, clsb_ref, out_ref, h_ref, last_ref = refs[3 + 2 * n_extra:]

        tb = pl.program_id(0)

        @pl.when(tb == 0)
        def _init():
            h_ref[...] = jnp.zeros_like(h_ref)
            last_ref[...] = jnp.zeros_like(last_ref)

        len_m1 = len_ref[...] - 1                       # (B_pad, 1) int32

        # Static inner loop over the TT timesteps of this block (TT is small).
        for i in range(tt):
            t = tb * tt + i

            # Layer 0: input projection hoisted out (pre0 = E'[ids], bias folded).
            pre = pre0_ref[i] + jnp.dot(
                h_ref[0], whh0_ref[...], preferred_element_type=jnp.float32)
            h_new = jnp.tanh(pre)                       # f32 elementwise
            h_new_lp = h_new.astype(h_ref.dtype)        # bf16 for MXU / storage
            h_ref[0] = h_new_lp

            # Layers >= 1: single fused (B_pad, 2H) x (2H, H) matmul per layer.
            for l in range(1, num_layers):
                wcat_ref, b_ref = layer_refs[2 * (l - 1):2 * l]
                x_cat = jnp.concatenate([h_new_lp, h_ref[l]], axis=-1)
                pre = (
                    jnp.dot(x_cat, wcat_ref[...],
                            preferred_element_type=jnp.float32)
                    + b_ref[...]
                )
                h_new = jnp.tanh(pre)
                h_new_lp = h_new.astype(h_ref.dtype)
                h_ref[l] = h_new_lp

            # Capture last-layer hidden at t == length-1 per batch row.
            is_last = (len_m1 == t)                     # (B_pad, 1) bool
            last_ref[...] = jnp.where(is_last, h_new_lp, last_ref[...])

        # Final grid step: fused classifier Linear, one lane-dense f32 write.
        @pl.when(tb == pl.num_programs(0) - 1)
        def _finish():
            out_ref[...] = (
                jnp.dot(last_ref[...], clsw_ref[...],
                        preferred_element_type=jnp.float32)
                + clsb_ref[...]
            )

    return kernel


def fused_rnn_forward(pre0_tm, lengths_col, rnn_extra, w_hh0_t, cls_w_t, cls_b, tt):
    """pre0_tm: (T_pad, B_pad, H) time-major layer-0 pre-activations, T_pad % tt == 0."""
    T_pad, B_pad, H = pre0_tm.shape
    assert T_pad % tt == 0
    num_layers = 1 + len(rnn_extra)
    n_blocks = T_pad // tt

    in_specs = [
        pl.BlockSpec((B_pad, 1), lambda tb: (0, 0)),          # lengths (resident)
        pl.BlockSpec((tt, B_pad, H), lambda tb: (tb, 0, 0)),  # pre0, streamed per block
        pl.BlockSpec((H, H), lambda tb: (0, 0)),              # W_hh0^T (resident)
    ]
    args = [lengths_col, pre0_tm, w_hh0_t]
    for layer in rnn_extra:
        in_specs += [
            pl.BlockSpec((2 * H, H), lambda tb: (0, 0)),      # [W_ih; W_hh]^T (resident)
            pl.BlockSpec((1, H), lambda tb: (0, 0)),          # bias
        ]
        args += [layer["w_cat_t"], layer["bias"]]
    in_specs += [
        pl.BlockSpec((H, H), lambda tb: (0, 0)),              # classifier W^T
        pl.BlockSpec((1, H), lambda tb: (0, 0)),              # classifier bias
    ]
    args += [cls_w_t, cls_b]

    return pl.pallas_call(
        _make_fused_rnn_kernel(num_layers, tt),
        out_shape=jax.ShapeDtypeStruct((B_pad, H), jnp.float32),
        grid=(n_blocks,),
        in_specs=in_specs,
        out_specs=pl.BlockSpec((B_pad, H), lambda tb: (0, 0)),  # resident, written once
        scratch_shapes=[
            pltpu.VMEM((num_layers, B_pad, H), jnp.bfloat16),   # carried hidden states
            pltpu.VMEM((B_pad, H), jnp.bfloat16),               # last-valid hidden
        ],
        compiler_params=pltpu.CompilerParams(
            dimension_semantics=("arbitrary",),  # time recurrence is serial
        ),
    )(*args)


# ----------------------------------------------------------------------------
# Full SpeakerRNN forward
# ----------------------------------------------------------------------------
def speaker_rnn_forward(params, audios, lengths, labels, *, time_block=16):
    """audios: (B, T) int32 token ids; lengths: (B,) int32; labels: (B,) int32."""
    lengths = jnp.asarray(lengths, dtype=jnp.int32)

    # sort lengths descending + permute (torch: lengths.sort(0, descending=True))
    perm_idx = jnp.argsort(-lengths)
    lengths_sorted = lengths[perm_idx]
    audios = audios[perm_idx]
    labels = labels[perm_idx]

    B, T = audios.shape
    H = params["cls_b"].shape[-1]

    # Layer-0 input projection + bias folded into the frozen embedding table:
    #   pre0[t, b] = (embed @ W_ih0^T + b0)[audios[b, t]]
    audios_tm = audios.T                                         # (T, B)
    pre0 = jnp.take(params["embed_proj0"], audios_tm, axis=0)    # (T, B, H) f32

    # Pad batch to a multiple of 8 so sublanes / MXU rows are fully used.
    B_pad = -(-B // 8) * 8
    bpad = B_pad - B
    # Pad time to a multiple of the time block; padded steps are never captured.
    tt = max(1, min(time_block, T))
    T_pad = -(-T // tt) * tt
    tpad = T_pad - T
    if bpad or tpad:
        pre0 = jnp.pad(pre0, ((0, tpad), (0, bpad), (0, 0)))
    lengths_padded = jnp.pad(lengths_sorted, (0, bpad), constant_values=1) if bpad \
        else lengths_sorted
    # Clamp to >= 1 so a zero-length sequence cannot alias another timestep.
    lengths_col = jnp.maximum(lengths_padded, 1).reshape(B_pad, 1).astype(jnp.int32)

    out_pad = fused_rnn_forward(
        pre0, lengths_col, params["rnn_extra"],
        params["w_hh0_t"], params["cls_w_t"], params["cls_b"], tt,
    )
    output = out_pad[:B]
    return output, labels


# ----------------------------------------------------------------------------
# Deterministic parameter initialization (shapes from __init__)
# ----------------------------------------------------------------------------
def init_params(key, num_layers=2, input_dim=512, hidden_dim=128):
    keys = jax.random.split(key, 2 + 4 * num_layers + 2)
    ki = iter(range(len(keys)))

    # Embedding(2001, input_dim), padding_idx=2000 -> zero row (frozen)
    embed = jax.random.normal(keys[next(ki)], (2001, input_dim), dtype=jnp.float32)
    embed = embed.at[2000].set(0.0)

    k = 1.0 / jnp.sqrt(hidden_dim)
    rnn_raw = []
    d_in = input_dim
    for _ in range(num_layers):
        w_ih = jax.random.uniform(keys[next(ki)], (hidden_dim, d_in), minval=-k, maxval=k)
        w_hh = jax.random.uniform(keys[next(ki)], (hidden_dim, hidden_dim), minval=-k, maxval=k)
        b_ih = jax.random.uniform(keys[next(ki)], (hidden_dim,), minval=-k, maxval=k)
        b_hh = jax.random.uniform(keys[next(ki)], (hidden_dim,), minval=-k, maxval=k)
        rnn_raw.append((w_ih, w_hh, b_ih + b_hh))
        d_in = hidden_dim

    cls_w = jax.random.uniform(keys[next(ki)], (hidden_dim, hidden_dim), minval=-k, maxval=k)
    cls_b = jax.random.uniform(keys[next(ki)], (hidden_dim,), minval=-k, maxval=k)

    # Fold the frozen embedding through layer-0's input projection AND bias:
    #   embed_proj0 = embed @ W_ih0^T + b0   (padding row -> b0, matching PyTorch's
    #   zero embedding + bias for padding tokens).
    w_ih0, w_hh0, bias0 = rnn_raw[0]
    embed_proj0 = jnp.dot(embed, w_ih0.T) + bias0[None, :]       # (2001, H)

    rnn_extra = []
    for (w_ih, w_hh, bias) in rnn_raw[1:]:
        # One fused weight so [h_below, h_prev] @ W_cat == h_below@W_ih^T + h_prev@W_hh^T
        w_cat_t = jnp.concatenate([w_ih.T, w_hh.T], axis=0)      # (2H, H)
        rnn_extra.append(dict(
            w_cat_t=w_cat_t.astype(jnp.bfloat16),                        # (2H, H) bf16
            bias=bias.reshape(1, hidden_dim).astype(jnp.float32),        # (1, H) f32
        ))

    return dict(
        embed_proj0=embed_proj0.astype(jnp.float32),                     # (2001, H) f32
        w_hh0_t=w_hh0.T.astype(jnp.bfloat16),                            # (H, H) bf16
        rnn_extra=rnn_extra,
        cls_w_t=cls_w.T.astype(jnp.bfloat16),                            # (H, H) bf16
        cls_b=cls_b.reshape(1, hidden_dim).astype(jnp.float32),          # (1, H) f32
    )


if __name__ == "__main__":
    NUM_LAYERS = 2
    INPUT_DIM = 512
    HIDDEN_DIM = 128
    B, T = 2, 8

    key = jax.random.PRNGKey(0)
    pkey, akey, lkey = jax.random.split(key, 3)

    params = init_params(pkey, NUM_LAYERS, INPUT_DIM, HIDDEN_DIM)

    # token ids in [0, 2000); pad beyond each sequence length with padding idx 2000
    audios = jax.random.randint(akey, (B, T), 0, 2000, dtype=jnp.int32)
    lengths = jnp.array([5, 8], dtype=jnp.int32)
    pad_mask = jnp.arange(T)[None, :] >= lengths[:, None]
    audios = jnp.where(pad_mask, 2000, audios)
    labels = jax.random.randint(lkey, (B,), 0, 30, dtype=jnp.int32)

    fwd = jax.jit(functools.partial(speaker_rnn_forward, params))
    output, labels_out = fwd(audios, lengths, labels)
    jax.block_until_ready((output, labels_out))

    assert output.shape == (B, HIDDEN_DIM), output.shape
    assert labels_out.shape == (B,), labels_out.shape
    assert bool(jnp.all(jnp.isfinite(output)))
    print("KERNEL_OK")
</pallas_src>

<mosaic_0001>
module attributes {stable_mosaic.version = 11 : i64} {
  func.func @kernel(%arg0: i32, %arg1: memref<8x1xi32, #tpu.memory_space<vmem>>, %arg2: memref<8x8x128xf32, #tpu.memory_space<vmem>>, %arg3: memref<128x128xbf16, #tpu.memory_space<vmem>>, %arg4: memref<256x128xbf16, #tpu.memory_space<vmem>>, %arg5: memref<1x128xf32, #tpu.memory_space<vmem>>, %arg6: memref<128x128xbf16, #tpu.memory_space<vmem>>, %arg7: memref<1x128xf32, #tpu.memory_space<vmem>>, %arg8: memref<8x128xf32, #tpu.memory_space<vmem>>, %arg9: memref<2x8x128xbf16, #tpu.memory_space<vmem>>, %arg10: memref<8x128xbf16, #tpu.memory_space<vmem>>) attributes {dimension_semantics = [#tpu.dimension_semantics<arbitrary>], iteration_bounds = array<i64: 1>, scalar_prefetch = 0 : i64, scratch_operands = 2 : i64, tpu.core_type = #tpu.core_type<tc>, window_params = [{pipeline_mode = #tpu.pipeline_mode<synchronous>, transform_indices = @transform_0, window_bounds = array<i64: 8, 1>}, {transform_indices = @transform_1, window_bounds = array<i64: 8, 8, 128>}, {pipeline_mode = #tpu.pipeline_mode<synchronous>, transform_indices = @transform_2, window_bounds = array<i64: 128, 128>}, {pipeline_mode = #tpu.pipeline_mode<synchronous>, transform_indices = @transform_3, window_bounds = array<i64: 256, 128>}, {pipeline_mode = #tpu.pipeline_mode<synchronous>, transform_indices = @transform_4, window_bounds = array<i64: 1, 128>}, {pipeline_mode = #tpu.pipeline_mode<synchronous>, transform_indices = @transform_5, window_bounds = array<i64: 128, 128>}, {pipeline_mode = #tpu.pipeline_mode<synchronous>, transform_indices = @transform_6, window_bounds = array<i64: 1, 128>}, {pipeline_mode = #tpu.pipeline_mode<synchronous>, transform_indices = @transform_7, window_bounds = array<i64: 8, 128>}]} {
    %c0_i32 = arith.constant 0 : i32
    %0 = arith.cmpi eq, %arg0, %c0_i32 : i32
    %1 = arith.extui %0 : i1 to i32
    %c0_i32_0 = arith.constant 0 : i32
    %2 = arith.cmpi ne, %1, %c0_i32_0 : i32
    scf.if %2 {
      %cst_221 = arith.constant 0.000000e+00 : bf16
      %281 = vector.broadcast %cst_221 : bf16 to vector<2x8x128xbf16>
      %c0_222 = arith.constant 0 : index
      %c0_223 = arith.constant 0 : index
      %c0_224 = arith.constant 0 : index
      %282 = vector.load %arg9[%c0_222, %c0_223, %c0_224] : memref<2x8x128xbf16, #tpu.memory_space<vmem>>, vector<2x8x128xbf16>
      tpu.vector_store %arg9[%c0_222, %c0_223, %c0_224], %281 {strides = array<i32>} : memref<2x8x128xbf16, #tpu.memory_space<vmem>>, vector<2x8x128xbf16>,
      %cst_225 = arith.constant 0.000000e+00 : bf16
      %283 = vector.broadcast %cst_225 : bf16 to vector<8x128xbf16>
      %c0_226 = arith.constant 0 : index
      %c0_227 = arith.constant 0 : index
      %284 = vector.load %arg10[%c0_226, %c0_227] : memref<8x128xbf16, #tpu.memory_space<vmem>>, vector<8x128xbf16>
      tpu.vector_store %arg10[%c0_226, %c0_227], %283 {strides = array<i32>} : memref<8x128xbf16, #tpu.memory_space<vmem>>, vector<8x128xbf16>,
    } else {
    }
    %c0 = arith.constant 0 : index
    %c0_1 = arith.constant 0 : index
    %3 = vector.load %arg1[%c0, %c0_1] : memref<8x1xi32, #tpu.memory_space<vmem>>, vector<8x1xi32>
    %c1_i32 = arith.constant 1 : i32
    %4 = vector.broadcast %c1_i32 : i32 to vector<8x1xi32>
    %5 = arith.subi %3, %4 : vector<8x1xi32>
    %c8_i32 = arith.constant 8 : i32
    %6 = arith.muli %arg0, %c8_i32 : i32
    %c0_i32_2 = arith.constant 0 : i32
    %7 = arith.addi %6, %c0_i32_2 : i32
    %c0_3 = arith.constant 0 : index
    %c0_4 = arith.constant 0 : index
    %c0_5 = arith.constant 0 : index
    %8 = vector.load %arg2[%c0_3, %c0_4, %c0_5] : memref<8x8x128xf32, #tpu.memory_space<vmem>>, vector<1x8x128xf32>
    %9 = vector.shape_cast %8 : vector<1x8x128xf32> to vector<8x128xf32>
    %c0_6 = arith.constant 0 : index
    %c0_7 = arith.constant 0 : index
    %c0_8 = arith.constant 0 : index
    %10 = vector.load %arg9[%c0_6, %c0_7, %c0_8] : memref<2x8x128xbf16, #tpu.memory_space<vmem>>, vector<1x8x128xbf16>
    %11 = vector.shape_cast %10 : vector<1x8x128xbf16> to vector<8x128xbf16>
    %c0_9 = arith.constant 0 : index
    %c0_10 = arith.constant 0 : index
    %12 = vector.load %arg3[%c0_9, %c0_10] : memref<128x128xbf16, #tpu.memory_space<vmem>>, vector<128x128xbf16>
    %cst = arith.constant dense<0.000000e+00> : vector<8x128xf32>
    %13 = tpu.matmul %11, %12, %cst {dimension_numbers = #tpu.dot_dimension_numbers<[1], [0], [0], [1], [0, 0, 1, 1], [], []>} : vector<8x128xbf16>, vector<128x128xbf16>, vector<8x128xf32> -> vector<8x128xf32>
    %14 = arith.addf %9, %13 : vector<8x128xf32>
    %15 = math.tanh %14 : vector<8x128xf32>
    %16 = arith.truncf %15 : vector<8x128xf32> to vector<8x128xbf16>
    %c0_11 = arith.constant 0 : index
    %c0_12 = arith.constant 0 : index
    %c0_13 = arith.constant 0 : index
    %17 = vector.load %arg9[%c0_11, %c0_12, %c0_13] : memref<2x8x128xbf16, #tpu.memory_space<vmem>>, vector<1x8x128xbf16>
    %18 = vector.shape_cast %17 : vector<1x8x128xbf16> to vector<8x128xbf16>
    %19 = vector.shape_cast %16 : vector<8x128xbf16> to vector<1x8x128xbf16>
    tpu.vector_store %arg9[%c0_11, %c0_12, %c0_13], %19 {strides = array<i32>} : memref<2x8x128xbf16, #tpu.memory_space<vmem>>, vector<1x8x128xbf16>,
    %c1 = arith.constant 1 : index
    %c0_14 = arith.constant 0 : index
    %c0_15 = arith.constant 0 : index
    %20 = vector.load %arg9[%c1, %c0_14, %c0_15] : memref<2x8x128xbf16, #tpu.memory_space<vmem>>, vector<1x8x128xbf16>
    %21 = vector.shape_cast %20 : vector<1x8x128xbf16> to vector<8x128xbf16>
    %22 = tpu.concatenate %16, %21 in 1 : vector<8x128xbf16>, vector<8x128xbf16> -> vector<8x256xbf16>
    %c0_16 = arith.constant 0 : index
    %c0_17 = arith.constant 0 : index
    %23 = vector.load %arg4[%c0_16, %c0_17] : memref<256x128xbf16, #tpu.memory_space<vmem>>, vector<256x128xbf16>
    %cst_18 = arith.constant dense<0.000000e+00> : vector<8x128xf32>
    %24 = tpu.matmul %22, %23, %cst_18 {dimension_numbers = #tpu.dot_dimension_numbers<[1], [0], [0], [1], [0, 0, 1, 1], [], []>} : vector<8x256xbf16>, vector<256x128xbf16>, vector<8x128xf32> -> vector<8x128xf32>
    %c0_19 = arith.constant 0 : index
    %c0_20 = arith.constant 0 : index
    %25 = vector.load %arg5[%c0_19, %c0_20] : memref<1x128xf32, #tpu.memory_space<vmem>>, vector<1x128xf32>
    %26 = vector.broadcast %25 : vector<1x128xf32> to vector<8x128xf32>
    %27 = arith.addf %24, %26 : vector<8x128xf32>
    %28 = math.tanh %27 : vector<8x128xf32>
    %29 = arith.truncf %28 : vector<8x128xf32> to vector<8x128xbf16>
    %c1_21 = arith.constant 1 : index
    %c0_22 = arith.constant 0 : index
    %c0_23 = arith.constant 0 : index
    %30 = vector.load %arg9[%c1_21, %c0_22, %c0_23] : memref<2x8x128xbf16, #tpu.memory_space<vmem>>, vector<1x8x128xbf16>
    %31 = vector.shape_cast %30 : vector<1x8x128xbf16> to vector<8x128xbf16>
    %32 = vector.shape_cast %29 : vector<8x128xbf16> to vector<1x8x128xbf16>
    tpu.vector_store %arg9[%c1_21, %c0_22, %c0_23], %32 {strides = array<i32>} : memref<2x8x128xbf16, #tpu.memory_space<vmem>>, vector<1x8x128xbf16>,
    %33 = vector.broadcast %7 : i32 to vector<8x1xi32>
    %34 = arith.cmpi eq, %5, %33 : vector<8x1xi32>
    %c0_24 = arith.constant 0 : index
    %c0_25 = arith.constant 0 : index
    %35 = vector.load %arg10[%c0_24, %c0_25] : memref<8x128xbf16, #tpu.memory_space<vmem>>, vector<8x128xbf16>
    %36 = vector.shape_cast %34 : vector<8x1xi1> to vector<8x1xi1>
    %37 = vector.broadcast %36 : vector<8x1xi1> to vector<8x128xi1>
    %38 = arith.select %37, %29, %35 : vector<8x128xi1>, vector<8x128xbf16>
    %c0_26 = arith.constant 0 : index
    %c0_27 = arith.constant 0 : index
    %39 = vector.load %arg10[%c0_26, %c0_27] : memref<8x128xbf16, #tpu.memory_space<vmem>>, vector<8x128xbf16>
    tpu.vector_store %arg10[%c0_26, %c0_27], %38 {strides = array<i32>} : memref<8x128xbf16, #tpu.memory_space<vmem>>, vector<8x128xbf16>,
    %c8_i32_28 = arith.constant 8 : i32
    %40 = arith.muli %arg0, %c8_i32_28 : i32
    %c1_i32_29 = arith.constant 1 : i32
    %41 = arith.addi %40, %c1_i32_29 : i32
    %c1_30 = arith.constant 1 : index
    %c0_31 = arith.constant 0 : index
    %c0_32 = arith.constant 0 : index
    %42 = vector.load %arg2[%c1_30, %c0_31, %c0_32] : memref<8x8x128xf32, #tpu.memory_space<vmem>>, vector<1x8x128xf32>
    %43 = vector.shape_cast %42 : vector<1x8x128xf32> to vector<8x128xf32>
    %c0_33 = arith.constant 0 : index
    %c0_34 = arith.constant 0 : index
    %c0_35 = arith.constant 0 : index
    %44 = vector.load %arg9[%c0_33, %c0_34, %c0_35] : memref<2x8x128xbf16, #tpu.memory_space<vmem>>, vector<1x8x128xbf16>
    %45 = vector.shape_cast %44 : vector<1x8x128xbf16> to vector<8x128xbf16>
    %c0_36 = arith.constant 0 : index
    %c0_37 = arith.constant 0 : index
    %46 = vector.load %arg3[%c0_36, %c0_37] : memref<128x128xbf16, #tpu.memory_space<vmem>>, vector<128x128xbf16>
    %cst_38 = arith.constant dense<0.000000e+00> : vector<8x128xf32>
    %47 = tpu.matmul %45, %46, %cst_38 {dimension_numbers = #tpu.dot_dimension_numbers<[1], [0], [0], [1], [0, 0, 1, 1], [], []>} : vector<8x128xbf16>, vector<128x128xbf16>, vector<8x128xf32> -> vector<8x128xf32>
    %48 = arith.addf %43, %47 : vector<8x128xf32>
    %49 = math.tanh %48 : vector<8x128xf32>
    %50 = arith.truncf %49 : vector<8x128xf32> to vector<8x128xbf16>
    %c0_39 = arith.constant 0 : index
    %c0_40 = arith.constant 0 : index
    %c0_41 = arith.constant 0 : index
    %51 = vector.load %arg9[%c0_39, %c0_40, %c0_41] : memref<2x8x128xbf16, #tpu.memory_space<vmem>>, vector<1x8x128xbf16>
    %52 = vector.shape_cast %51 : vector<1x8x128xbf16> to vector<8x128xbf16>
    %53 = vector.shape_cast %50 : vector<8x128xbf16> to vector<1x8x128xbf16>
    tpu.vector_store %arg9[%c0_39, %c0_40, %c0_41], %53 {strides = array<i32>} : memref<2x8x128xbf16, #tpu.memory_space<vmem>>, vector<1x8x128xbf16>,
    %c1_42 = arith.constant 1 : index
    %c0_43 = arith.constant 0 : index
    %c0_44 = arith.constant 0 : index
    %54 = vector.load %arg9[%c1_42, %c0_43, %c0_44] : memref<2x8x128xbf16, #tpu.memory_space<vmem>>, vector<1x8x128xbf16>
    %55 = vector.shape_cast %54 : vector<1x8x128xbf16> to vector<8x128xbf16>
    %56 = tpu.concatenate %50, %55 in 1 : vector<8x128xbf16>, vector<8x128xbf16> -> vector<8x256xbf16>
    %c0_45 = arith.constant 0 : index
    %c0_46 = arith.constant 0 : index
    %57 = vector.load %arg4[%c0_45, %c0_46] : memref<256x128xbf16, #tpu.memory_space<vmem>>, vector<256x128xbf16>
    %cst_47 = arith.constant dense<0.000000e+00> : vector<8x128xf32>
    %58 = tpu.matmul %56, %57, %cst_47 {dimension_numbers = #tpu.dot_dimension_numbers<[1], [0], [0], [1], [0, 0, 1, 1], [], []>} : vector<8x256xbf16>, vector<256x128xbf16>, vector<8x128xf32> -> vector<8x128xf32>
    %c0_48 = arith.constant 0 : index
    %c0_49 = arith.constant 0 : index
    %59 = vector.load %arg5[%c0_48, %c0_49] : memref<1x128xf32, #tpu.memory_space<vmem>>, vector<1x128xf32>
    %60 = vector.broadcast %59 : vector<1x128xf32> to vector<8x128xf32>
    %61 = arith.addf %58, %60 : vector<8x128xf32>
    %62 = math.tanh %61 : vector<8x128xf32>
    %63 = arith.truncf %62 : vector<8x128xf32> to vector<8x128xbf16>
    %c1_50 = arith.constant 1 : index
    %c0_51 = arith.constant 0 : index
    %c0_52 = arith.constant 0 : index
    %64 = vector.load %arg9[%c1_50, %c0_51, %c0_52] : memref<2x8x128xbf16, #tpu.memory_space<vmem>>, vector<1x8x128xbf16>
    %65 = vector.shape_cast %64 : vector<1x8x128xbf16> to vector<8x128xbf16>
    %66 = vector.shape_cast %63 : vector<8x128xbf16> to vector<1x8x128xbf16>
    tpu.vector_store %arg9[%c1_50, %c0_51, %c0_52], %66 {strides = array<i32>} : memref<2x8x128xbf16, #tpu.memory_space<vmem>>, vector<1x8x128xbf16>,
    %67 = vector.broadcast %41 : i32 to vector<8x1xi32>
    %68 = arith.cmpi eq, %5, %67 : vector<8x1xi32>
    %c0_53 = arith.constant 0 : index
    %c0_54 = arith.constant 0 : index
    %69 = vector.load %arg10[%c0_53, %c0_54] : memref<8x128xbf16, #tpu.memory_space<vmem>>, vector<8x128xbf16>
    %70 = vector.shape_cast %68 : vector<8x1xi1> to vector<8x1xi1>
    %71 = vector.broadcast %70 : vector<8x1xi1> to vector<8x128xi1>
    %72 = arith.select %71, %63, %69 : vector<8x128xi1>, vector<8x128xbf16>
    %c0_55 = arith.constant 0 : index
    %c0_56 = arith.constant 0 : index
    %73 = vector.load %arg10[%c0_55, %c0_56] : memref<8x128xbf16, #tpu.memory_space<vmem>>, vector<8x128xbf16>
    tpu.vector_store %arg10[%c0_55, %c0_56], %72 {strides = array<i32>} : memref<8x128xbf16, #tpu.memory_space<vmem>>, vector<8x128xbf16>,
    %c8_i32_57 = arith.constant 8 : i32
    %74 = arith.muli %arg0, %c8_i32_57 : i32
    %c2_i32 = arith.constant 2 : i32
    %75 = arith.addi %74, %c2_i32 : i32
    %c2 = arith.constant 2 : index
    %c0_58 = arith.constant 0 : index
    %c0_59 = arith.constant 0 : index
    %76 = vector.load %arg2[%c2, %c0_58, %c0_59] : memref<8x8x128xf32, #tpu.memory_space<vmem>>, vector<1x8x128xf32>
    %77 = vector.shape_cast %76 : vector<1x8x128xf32> to vector<8x128xf32>
    %c0_60 = arith.constant 0 : index
    %c0_61 = arith.constant 0 : index
    %c0_62 = arith.constant 0 : index
    %78 = vector.load %arg9[%c0_60, %c0_61, %c0_62] : memref<2x8x128xbf16, #tpu.memory_space<vmem>>, vector<1x8x128xbf16>
    %79 = vector.shape_cast %78 : vector<1x8x128xbf16> to vector<8x128xbf16>
    %c0_63 = arith.constant 0 : index
    %c0_64 = arith.constant 0 : index
    %80 = vector.load %arg3[%c0_63, %c0_64] : memref<128x128xbf16, #tpu.memory_space<vmem>>, vector<128x128xbf16>
    %cst_65 = arith.constant dense<0.000000e+00> : vector<8x128xf32>
    %81 = tpu.matmul %79, %80, %cst_65 {dimension_numbers = #tpu.dot_dimension_numbers<[1], [0], [0], [1], [0, 0, 1, 1], [], []>} : vector<8x128xbf16>, vector<128x128xbf16>, vector<8x128xf32> -> vector<8x128xf32>
    %82 = arith.addf %77, %81 : vector<8x128xf32>
    %83 = math.tanh %82 : vector<8x128xf32>
    %84 = arith.truncf %83 : vector<8x128xf32> to vector<8x128xbf16>
    %c0_66 = arith.constant 0 : index
    %c0_67 = arith.constant 0 : index
    %c0_68 = arith.constant 0 : index
    %85 = vector.load %arg9[%c0_66, %c0_67, %c0_68] : memref<2x8x128xbf16, #tpu.memory_space<vmem>>, vector<1x8x128xbf16>
    %86 = vector.shape_cast %85 : vector<1x8x128xbf16> to vector<8x128xbf16>
    %87 = vector.shape_cast %84 : vector<8x128xbf16> to vector<1x8x128xbf16>
    tpu.vector_store %arg9[%c0_66, %c0_67, %c0_68], %87 {strides = array<i32>} : memref<2x8x128xbf16, #tpu.memory_space<vmem>>, vector<1x8x128xbf16>,
    %c1_69 = arith.constant 1 : index
    %c0_70 = arith.constant 0 : index
    %c0_71 = arith.constant 0 : index
    %88 = vector.load %arg9[%c1_69, %c0_70, %c0_71] : memref<2x8x128xbf16, #tpu.memory_space<vmem>>, vector<1x8x128xbf16>
    %89 = vector.shape_cast %88 : vector<1x8x128xbf16> to vector<8x128xbf16>
    %90 = tpu.concatenate %84, %89 in 1 : vector<8x128xbf16>, vector<8x128xbf16> -> vector<8x256xbf16>
    %c0_72 = arith.constant 0 : index
    %c0_73 = arith.constant 0 : index
    %91 = vector.load %arg4[%c0_72, %c0_73] : memref<256x128xbf16, #tpu.memory_space<vmem>>, vector<256x128xbf16>
    %cst_74 = arith.constant dense<0.000000e+00> : vector<8x128xf32>
    %92 = tpu.matmul %90, %91, %cst_74 {dimension_numbers = #tpu.dot_dimension_numbers<[1], [0], [0], [1], [0, 0, 1, 1], [], []>} : vector<8x256xbf16>, vector<256x128xbf16>, vector<8x128xf32> -> vector<8x128xf32>
    %c0_75 = arith.constant 0 : index
    %c0_76 = arith.constant 0 : index
    %93 = vector.load %arg5[%c0_75, %c0_76] : memref<1x128xf32, #tpu.memory_space<vmem>>, vector<1x128xf32>
    %94 = vector.broadcast %93 : vector<1x128xf32> to vector<8x128xf32>
    %95 = arith.addf %92, %94 : vector<8x128xf32>
    %96 = math.tanh %95 : vector<8x128xf32>
    %97 = arith.truncf %96 : vector<8x128xf32> to vector<8x128xbf16>
    %c1_77 = arith.constant 1 : index
    %c0_78 = arith.constant 0 : index
    %c0_79 = arith.constant 0 : index
    %98 = vector.load %arg9[%c1_77, %c0_78, %c0_79] : memref<2x8x128xbf16, #tpu.memory_space<vmem>>, vector<1x8x128xbf16>
    %99 = vector.shape_cast %98 : vector<1x8x128xbf16> to vector<8x128xbf16>
    %100 = vector.shape_cast %97 : vector<8x128xbf16> to vector<1x8x128xbf16>
    tpu.vector_store %arg9[%c1_77, %c0_78, %c0_79], %100 {strides = array<i32>} : memref<2x8x128xbf16, #tpu.memory_space<vmem>>, vector<1x8x128xbf16>,
    %101 = vector.broadcast %75 : i32 to vector<8x1xi32>
    %102 = arith.cmpi eq, %5, %101 : vector<8x1xi32>
    %c0_80 = arith.constant 0 : index
    %c0_81 = arith.constant 0 : index
    %103 = vector.load %arg10[%c0_80, %c0_81] : memref<8x128xbf16, #tpu.memory_space<vmem>>, vector<8x128xbf16>
    %104 = vector.shape_cast %102 : vector<8x1xi1> to vector<8x1xi1>
    %105 = vector.broadcast %104 : vector<8x1xi1> to vector<8x128xi1>
    %106 = arith.select %105, %97, %103 : vector<8x128xi1>, vector<8x128xbf16>
    %c0_82 = arith.constant 0 : index
    %c0_83 = arith.constant 0 : index
    %107 = vector.load %arg10[%c0_82, %c0_83] : memref<8x128xbf16, #tpu.memory_space<vmem>>, vector<8x128xbf16>
    tpu.vector_store %arg10[%c0_82, %c0_83], %106 {strides = array<i32>} : memref<8x128xbf16, #tpu.memory_space<vmem>>, vector<8x128xbf16>,
    %c8_i32_84 = arith.constant 8 : i32
    %108 = arith.muli %arg0, %c8_i32_84 : i32
    %c3_i32 = arith.constant 3 : i32
    %109 = arith.addi %108, %c3_i32 : i32
    %c3 = arith.constant 3 : index
    %c0_85 = arith.constant 0 : index
    %c0_86 = arith.constant 0 : index
    %110 = vector.load %arg2[%c3, %c0_85, %c0_86] : memref<8x8x128xf32, #tpu.memory_space<vmem>>, vector<1x8x128xf32>
    %111 = vector.shape_cast %110 : vector<1x8x128xf32> to vector<8x128xf32>
    %c0_87 = arith.constant 0 : index
    %c0_88 = arith.constant 0 : index
    %c0_89 = arith.constant 0 : index
    %112 = vector.load %arg9[%c0_87, %c0_88, %c0_89] : memref<2x8x128xbf16, #tpu.memory_space<vmem>>, vector<1x8x128xbf16>
    %113 = vector.shape_cast %112 : vector<1x8x128xbf16> to vector<8x128xbf16>
    %c0_90 = arith.constant 0 : index
    %c0_91 = arith.constant 0 : index
    %114 = vector.load %arg3[%c0_90, %c0_91] : memref<128x128xbf16, #tpu.memory_space<vmem>>, vector<128x128xbf16>
    %cst_92 = arith.constant dense<0.000000e+00> : vector<8x128xf32>
    %115 = tpu.matmul %113, %114, %cst_92 {dimension_numbers = #tpu.dot_dimension_numbers<[1], [0], [0], [1], [0, 0, 1, 1], [], []>} : vector<8x128xbf16>, vector<128x128xbf16>, vector<8x128xf32> -> vector<8x128xf32>
    %116 = arith.addf %111, %115 : vector<8x128xf32>
    %117 = math.tanh %116 : vector<8x128xf32>
    %118 = arith.truncf %117 : vector<8x128xf32> to vector<8x128xbf16>
    %c0_93 = arith.constant 0 : index
    %c0_94 = arith.constant 0 : index
    %c0_95 = arith.constant 0 : index
    %119 = vector.load %arg9[%c0_93, %c0_94, %c0_95] : memref<2x8x128xbf16, #tpu.memory_space<vmem>>, vector<1x8x128xbf16>
    %120 = vector.shape_cast %119 : vector<1x8x128xbf16> to vector<8x128xbf16>
    %121 = vector.shape_cast %118 : vector<8x128xbf16> to vector<1x8x128xbf16>
    tpu.vector_store %arg9[%c0_93, %c0_94, %c0_95], %121 {strides = array<i32>} : memref<2x8x128xbf16, #tpu.memory_space<vmem>>, vector<1x8x128xbf16>,
    %c1_96 = arith.constant 1 : index
    %c0_97 = arith.constant 0 : index
    %c0_98 = arith.constant 0 : index
    %122 = vector.load %arg9[%c1_96, %c0_97, %c0_98] : memref<2x8x128xbf16, #tpu.memory_space<vmem>>, vector<1x8x128xbf16>
    %123 = vector.shape_cast %122 : vector<1x8x128xbf16> to vector<8x128xbf16>
    %124 = tpu.concatenate %118, %123 in 1 : vector<8x128xbf16>, vector<8x128xbf16> -> vector<8x256xbf16>
    %c0_99 = arith.constant 0 : index
    %c0_100 = arith.constant 0 : index
    %125 = vector.load %arg4[%c0_99, %c0_100] : memref<256x128xbf16, #tpu.memory_space<vmem>>, vector<256x128xbf16>
    %cst_101 = arith.constant dense<0.000000e+00> : vector<8x128xf32>
    %126 = tpu.matmul %124, %125, %cst_101 {dimension_numbers = #tpu.dot_dimension_numbers<[1], [0], [0], [1], [0, 0, 1, 1], [], []>} : vector<8x256xbf16>, vector<256x128xbf16>, vector<8x128xf32> -> vector<8x128xf32>
    %c0_102 = arith.constant 0 : index
    %c0_103 = arith.constant 0 : index
    %127 = vector.load %arg5[%c0_102, %c0_103] : memref<1x128xf32, #tpu.memory_space<vmem>>, vector<1x128xf32>
    %128 = vector.broadcast %127 : vector<1x128xf32> to vector<8x128xf32>
    %129 = arith.addf %126, %128 : vector<8x128xf32>
    %130 = math.tanh %129 : vector<8x128xf32>
    %131 = arith.truncf %130 : vector<8x128xf32> to vector<8x128xbf16>
    %c1_104 = arith.constant 1 : index
    %c0_105 = arith.constant 0 : index
    %c0_106 = arith.constant 0 : index
    %132 = vector.load %arg9[%c1_104, %c0_105, %c0_106] : memref<2x8x128xbf16, #tpu.memory_space<vmem>>, vector<1x8x128xbf16>
    %133 = vector.shape_cast %132 : vector<1x8x128xbf16> to vector<8x128xbf16>
    %134 = vector.shape_cast %131 : vector<8x128xbf16> to vector<1x8x128xbf16>
    tpu.vector_store %arg9[%c1_104, %c0_105, %c0_106], %134 {strides = array<i32>} : memref<2x8x128xbf16, #tpu.memory_space<vmem>>, vector<1x8x128xbf16>,
    %135 = vector.broadcast %109 : i32 to vector<8x1xi32>
    %136 = arith.cmpi eq, %5, %135 : vector<8x1xi32>
    %c0_107 = arith.constant 0 : index
    %c0_108 = arith.constant 0 : index
    %137 = vector.load %arg10[%c0_107, %c0_108] : memref<8x128xbf16, #tpu.memory_space<vmem>>, vector<8x128xbf16>
    %138 = vector.shape_cast %136 : vector<8x1xi1> to vector<8x1xi1>
    %139 = vector.broadcast %138 : vector<8x1xi1> to vector<8x128xi1>
    %140 = arith.select %139, %131, %137 : vector<8x128xi1>, vector<8x128xbf16>
    %c0_109 = arith.constant 0 : index
    %c0_110 = arith.constant 0 : index
    %141 = vector.load %arg10[%c0_109, %c0_110] : memref<8x128xbf16, #tpu.memory_space<vmem>>, vector<8x128xbf16>
    tpu.vector_store %arg10[%c0_109, %c0_110], %140 {strides = array<i32>} : memref<8x128xbf16, #tpu.memory_space<vmem>>, vector<8x128xbf16>,
    %c8_i32_111 = arith.constant 8 : i32
    %142 = arith.muli %arg0, %c8_i32_111 : i32
    %c4_i32 = arith.constant 4 : i32
    %143 = arith.addi %142, %c4_i32 : i32
    %c4 = arith.constant 4 : index
    %c0_112 = arith.constant 0 : index
    %c0_113 = arith.constant 0 : index
    %144 = vector.load %arg2[%c4, %c0_112, %c0_113] : memref<8x8x128xf32, #tpu.memory_space<vmem>>, vector<1x8x128xf32>
    %145 = vector.shape_cast %144 : vector<1x8x128xf32> to vector<8x128xf32>
    %c0_114 = arith.constant 0 : index
    %c0_115 = arith.constant 0 : index
    %c0_116 = arith.constant 0 : index
    %146 = vector.load %arg9[%c0_114, %c0_115, %c0_116] : memref<2x8x128xbf16, #tpu.memory_space<vmem>>, vector<1x8x128xbf16>
    %147 = vector.shape_cast %146 : vector<1x8x128xbf16> to vector<8x128xbf16>
    %c0_117 = arith.constant 0 : index
    %c0_118 = arith.constant 0 : index
    %148 = vector.load %arg3[%c0_117, %c0_118] : memref<128x128xbf16, #tpu.memory_space<vmem>>, vector<128x128xbf16>
    %cst_119 = arith.constant dense<0.000000e+00> : vector<8x128xf32>
    %149 = tpu.matmul %147, %148, %cst_119 {dimension_numbers = #tpu.dot_dimension_numbers<[1], [0], [0], [1], [0, 0, 1, 1], [], []>} : vector<8x128xbf16>, vector<128x128xbf16>, vector<8x128xf32> -> vector<8x128xf32>
    %150 = arith.addf %145, %149 : vector<8x128xf32>
    %151 = math.tanh %150 : vector<8x128xf32>
    %152 = arith.truncf %151 : vector<8x128xf32> to vector<8x128xbf16>
    %c0_120 = arith.constant 0 : index
    %c0_121 = arith.constant 0 : index
    %c0_122 = arith.constant 0 : index
    %153 = vector.load %arg9[%c0_120, %c0_121, %c0_122] : memref<2x8x128xbf16, #tpu.memory_space<vmem>>, vector<1x8x128xbf16>
    %154 = vector.shape_cast %153 : vector<1x8x128xbf16> to vector<8x128xbf16>
    %155 = vector.shape_cast %152 : vector<8x128xbf16> to vector<1x8x128xbf16>
    tpu.vector_store %arg9[%c0_120, %c0_121, %c0_122], %155 {strides = array<i32>} : memref<2x8x128xbf16, #tpu.memory_space<vmem>>, vector<1x8x128xbf16>,
    %c1_123 = arith.constant 1 : index
    %c0_124 = arith.constant 0 : index
    %c0_125 = arith.constant 0 : index
    %156 = vector.load %arg9[%c1_123, %c0_124, %c0_125] : memref<2x8x128xbf16, #tpu.memory_space<vmem>>, vector<1x8x128xbf16>
    %157 = vector.shape_cast %156 : vector<1x8x128xbf16> to vector<8x128xbf16>
    %158 = tpu.concatenate %152, %157 in 1 : vector<8x128xbf16>, vector<8x128xbf16> -> vector<8x256xbf16>
    %c0_126 = arith.constant 0 : index
    %c0_127 = arith.constant 0 : index
    %159 = vector.load %arg4[%c0_126, %c0_127] : memref<256x128xbf16, #tpu.memory_space<vmem>>, vector<256x128xbf16>
    %cst_128 = arith.constant dense<0.000000e+00> : vector<8x128xf32>
    %160 = tpu.matmul %158, %159, %cst_128 {dimension_numbers = #tpu.dot_dimension_numbers<[1], [0], [0], [1], [0, 0, 1, 1], [], []>} : vector<8x256xbf16>, vector<256x128xbf16>, vector<8x128xf32> -> vector<8x128xf32>
    %c0_129 = arith.constant 0 : index
    %c0_130 = arith.constant 0 : index
    %161 = vector.load %arg5[%c0_129, %c0_130] : memref<1x128xf32, #tpu.memory_space<vmem>>, vector<1x128xf32>
    %162 = vector.broadcast %161 : vector<1x128xf32> to vector<8x128xf32>
    %163 = arith.addf %160, %162 : vector<8x128xf32>
    %164 = math.tanh %163 : vector<8x128xf32>
    %165 = arith.truncf %164 : vector<8x128xf32> to vector<8x128xbf16>
    %c1_131 = arith.constant 1 : index
    %c0_132 = arith.constant 0 : index
    %c0_133 = arith.constant 0 : index
    %166 = vector.load %arg9[%c1_131, %c0_132, %c0_133] : memref<2x8x128xbf16, #tpu.memory_space<vmem>>, vector<1x8x128xbf16>
    %167 = vector.shape_cast %166 : vector<1x8x128xbf16> to vector<8x128xbf16>
    %168 = vector.shape_cast %165 : vector<8x128xbf16> to vector<1x8x128xbf16>
    tpu.vector_store %arg9[%c1_131, %c0_132, %c0_133], %168 {strides = array<i32>} : memref<2x8x128xbf16, #tpu.memory_space<vmem>>, vector<1x8x128xbf16>,
    %169 = vector.broadcast %143 : i32 to vector<8x1xi32>
    %170 = arith.cmpi eq, %5, %169 : vector<8x1xi32>
    %c0_134 = arith.constant 0 : index
    %c0_135 = arith.constant 0 : index
    %171 = vector.load %arg10[%c0_134, %c0_135] : memref<8x128xbf16, #tpu.memory_space<vmem>>, vector<8x128xbf16>
    %172 = vector.shape_cast %170 : vector<8x1xi1> to vector<8x1xi1>
    %173 = vector.broadcast %172 : vector<8x1xi1> to vector<8x128xi1>
    %174 = arith.select %173, %165, %171 : vector<8x128xi1>, vector<8x128xbf16>
    %c0_136 = arith.constant 0 : index
    %c0_137 = arith.constant 0 : index
    %175 = vector.load %arg10[%c0_136, %c0_137] : memref<8x128xbf16, #tpu.memory_space<vmem>>, vector<8x128xbf16>
    tpu.vector_store %arg10[%c0_136, %c0_137], %174 {strides = array<i32>} : memref<8x128xbf16, #tpu.memory_space<vmem>>, vector<8x128xbf16>,
    %c8_i32_138 = arith.constant 8 : i32
    %176 = arith.muli %arg0, %c8_i32_138 : i32
    %c5_i32 = arith.constant 5 : i32
    %177 = arith.addi %176, %c5_i32 : i32
    %c5 = arith.constant 5 : index
    %c0_139 = arith.constant 0 : index
    %c0_140 = arith.constant 0 : index
    %178 = vector.load %arg2[%c5, %c0_139, %c0_140] : memref<8x8x128xf32, #tpu.memory_space<vmem>>, vector<1x8x128xf32>
    %179 = vector.shape_cast %178 : vector<1x8x128xf32> to vector<8x128xf32>
    %c0_141 = arith.constant 0 : index
    %c0_142 = arith.constant 0 : index
    %c0_143 = arith.constant 0 : index
    %180 = vector.load %arg9[%c0_141, %c0_142, %c0_143] : memref<2x8x128xbf16, #tpu.memory_space<vmem>>, vector<1x8x128xbf16>
    %181 = vector.shape_cast %180 : vector<1x8x128xbf16> to vector<8x128xbf16>
    %c0_144 = arith.constant 0 : index
    %c0_145 = arith.constant 0 : index
    %182 = vector.load %arg3[%c0_144, %c0_145] : memref<128x128xbf16, #tpu.memory_space<vmem>>, vector<128x128xbf16>
    %cst_146 = arith.constant dense<0.000000e+00> : vector<8x128xf32>
    %183 = tpu.matmul %181, %182, %cst_146 {dimension_numbers = #tpu.dot_dimension_numbers<[1], [0], [0], [1], [0, 0, 1, 1], [], []>} : vector<8x128xbf16>, vector<128x128xbf16>, vector<8x128xf32> -> vector<8x128xf32>
    %184 = arith.addf %179, %183 : vector<8x128xf32>
    %185 = math.tanh %184 : vector<8x128xf32>
    %186 = arith.truncf %185 : vector<8x128xf32> to vector<8x128xbf16>
    %c0_147 = arith.constant 0 : index
    %c0_148 = arith.constant 0 : index
    %c0_149 = arith.constant 0 : index
    %187 = vector.load %arg9[%c0_147, %c0_148, %c0_149] : memref<2x8x128xbf16, #tpu.memory_space<vmem>>, vector<1x8x128xbf16>
    %188 = vector.shape_cast %187 : vector<1x8x128xbf16> to vector<8x128xbf16>
    %189 = vector.shape_cast %186 : vector<8x128xbf16> to vector<1x8x128xbf16>
    tpu.vector_store %arg9[%c0_147, %c0_148, %c0_149], %189 {strides = array<i32>} : memref<2x8x128xbf16, #tpu.memory_space<vmem>>, vector<1x8x128xbf16>,
    %c1_150 = arith.constant 1 : index
    %c0_151 = arith.constant 0 : index
    %c0_152 = arith.constant 0 : index
    %190 = vector.load %arg9[%c1_150, %c0_151, %c0_152] : memref<2x8x128xbf16, #tpu.memory_space<vmem>>, vector<1x8x128xbf16>
    %191 = vector.shape_cast %190 : vector<1x8x128xbf16> to vector<8x128xbf16>
    %192 = tpu.concatenate %186, %191 in 1 : vector<8x128xbf16>, vector<8x128xbf16> -> vector<8x256xbf16>
    %c0_153 = arith.constant 0 : index
    %c0_154 = arith.constant 0 : index
    %193 = vector.load %arg4[%c0_153, %c0_154] : memref<256x128xbf16, #tpu.memory_space<vmem>>, vector<256x128xbf16>
    %cst_155 = arith.constant dense<0.000000e+00> : vector<8x128xf32>
    %194 = tpu.matmul %192, %193, %cst_155 {dimension_numbers = #tpu.dot_dimension_numbers<[1], [0], [0], [1], [0, 0, 1, 1], [], []>} : vector<8x256xbf16>, vector<256x128xbf16>, vector<8x128xf32> -> vector<8x128xf32>
    %c0_156 = arith.constant 0 : index
    %c0_157 = arith.constant 0 : index
    %195 = vector.load %arg5[%c0_156, %c0_157] : memref<1x128xf32, #tpu.memory_space<vmem>>, vector<1x128xf32>
    %196 = vector.broadcast %195 : vector<1x128xf32> to vector<8x128xf32>
    %197 = arith.addf %194, %196 : vector<8x128xf32>
    %198 = math.tanh %197 : vector<8x128xf32>
    %199 = arith.truncf %198 : vector<8x128xf32> to vector<8x128xbf16>
    %c1_158 = arith.constant 1 : index
    %c0_159 = arith.constant 0 : index
    %c0_160 = arith.constant 0 : index
    %200 = vector.load %arg9[%c1_158, %c0_159, %c0_160] : memref<2x8x128xbf16, #tpu.memory_space<vmem>>, vector<1x8x128xbf16>
    %201 = vector.shape_cast %200 : vector<1x8x128xbf16> to vector<8x128xbf16>
    %202 = vector.shape_cast %199 : vector<8x128xbf16> to vector<1x8x128xbf16>
    tpu.vector_store %arg9[%c1_158, %c0_159, %c0_160], %202 {strides = array<i32>} : memref<2x8x128xbf16, #tpu.memory_space<vmem>>, vector<1x8x128xbf16>,
    %203 = vector.broadcast %177 : i32 to vector<8x1xi32>
    %204 = arith.cmpi eq, %5, %203 : vector<8x1xi32>
    %c0_161 = arith.constant 0 : index
    %c0_162 = arith.constant 0 : index
    %205 = vector.load %arg10[%c0_161, %c0_162] : memref<8x128xbf16, #tpu.memory_space<vmem>>, vector<8x128xbf16>
    %206 = vector.shape_cast %204 : vector<8x1xi1> to vector<8x1xi1>
    %207 = vector.broadcast %206 : vector<8x1xi1> to vector<8x128xi1>
    %208 = arith.select %207, %199, %205 : vector<8x128xi1>, vector<8x128xbf16>
    %c0_163 = arith.constant 0 : index
    %c0_164 = arith.constant 0 : index
    %209 = vector.load %arg10[%c0_163, %c0_164] : memref<8x128xbf16, #tpu.memory_space<vmem>>, vector<8x128xbf16>
    tpu.vector_store %arg10[%c0_163, %c0_164], %208 {strides = array<i32>} : memref<8x128xbf16, #tpu.memory_space<vmem>>, vector<8x128xbf16>,
    %c8_i32_165 = arith.constant 8 : i32
    %210 = arith.muli %arg0, %c8_i32_165 : i32
    %c6_i32 = arith.constant 6 : i32
    %211 = arith.addi %210, %c6_i32 : i32
    %c6 = arith.constant 6 : index
    %c0_166 = arith.constant 0 : index
    %c0_167 = arith.constant 0 : index
    %212 = vector.load %arg2[%c6, %c0_166, %c0_167] : memref<8x8x128xf32, #tpu.memory_space<vmem>>, vector<1x8x128xf32>
    %213 = vector.shape_cast %212 : vector<1x8x128xf32> to vector<8x128xf32>
    %c0_168 = arith.constant 0 : index
    %c0_169 = arith.constant 0 : index
    %c0_170 = arith.constant 0 : index
    %214 = vector.load %arg9[%c0_168, %c0_169, %c0_170] : memref<2x8x128xbf16, #tpu.memory_space<vmem>>, vector<1x8x128xbf16>
    %215 = vector.shape_cast %214 : vector<1x8x128xbf16> to vector<8x128xbf16>
    %c0_171 = arith.constant 0 : index
    %c0_172 = arith.constant 0 : index
    %216 = vector.load %arg3[%c0_171, %c0_172] : memref<128x128xbf16, #tpu.memory_space<vmem>>, vector<128x128xbf16>
    %cst_173 = arith.constant dense<0.000000e+00> : vector<8x128xf32>
    %217 = tpu.matmul %215, %216, %cst_173 {dimension_numbers = #tpu.dot_dimension_numbers<[1], [0], [0], [1], [0, 0, 1, 1], [], []>} : vector<8x128xbf16>, vector<128x128xbf16>, vector<8x128xf32> -> vector<8x128xf32>
    %218 = arith.addf %213, %217 : vector<8x128xf32>
    %219 = math.tanh %218 : vector<8x128xf32>
    %220 = arith.truncf %219 : vector<8x128xf32> to vector<8x128xbf16>
    %c0_174 = arith.constant 0 : index
    %c0_175 = arith.constant 0 : index
    %c0_176 = arith.constant 0 : index
    %221 = vector.load %arg9[%c0_174, %c0_175, %c0_176] : memref<2x8x128xbf16, #tpu.memory_space<vmem>>, vector<1x8x128xbf16>
    %222 = vector.shape_cast %221 : vector<1x8x128xbf16> to vector<8x128xbf16>
    %223 = vector.shape_cast %220 : vector<8x128xbf16> to vector<1x8x128xbf16>
    tpu.vector_store %arg9[%c0_174, %c0_175, %c0_176], %223 {strides = array<i32>} : memref<2x8x128xbf16, #tpu.memory_space<vmem>>, vector<1x8x128xbf16>,
    %c1_177 = arith.constant 1 : index
    %c0_178 = arith.constant 0 : index
    %c0_179 = arith.constant 0 : index
    %224 = vector.load %arg9[%c1_177, %c0_178, %c0_179] : memref<2x8x128xbf16, #tpu.memory_space<vmem>>, vector<1x8x128xbf16>
    %225 = vector.shape_cast %224 : vector<1x8x128xbf16> to vector<8x128xbf16>
    %226 = tpu.concatenate %220, %225 in 1 : vector<8x128xbf16>, vector<8x128xbf16> -> vector<8x256xbf16>
    %c0_180 = arith.constant 0 : index
    %c0_181 = arith.constant 0 : index
    %227 = vector.load %arg4[%c0_180, %c0_181] : memref<256x128xbf16, #tpu.memory_space<vmem>>, vector<256x128xbf16>
    %cst_182 = arith.constant dense<0.000000e+00> : vector<8x128xf32>
    %228 = tpu.matmul %226, %227, %cst_182 {dimension_numbers = #tpu.dot_dimension_numbers<[1], [0], [0], [1], [0, 0, 1, 1], [], []>} : vector<8x256xbf16>, vector<256x128xbf16>, vector<8x128xf32> -> vector<8x128xf32>
    %c0_183 = arith.constant 0 : index
    %c0_184 = arith.constant 0 : index
    %229 = vector.load %arg5[%c0_183, %c0_184] : memref<1x128xf32, #tpu.memory_space<vmem>>, vector<1x128xf32>
    %230 = vector.broadcast %229 : vector<1x128xf32> to vector<8x128xf32>
    %231 = arith.addf %228, %230 : vector<8x128xf32>
    %232 = math.tanh %231 : vector<8x128xf32>
    %233 = arith.truncf %232 : vector<8x128xf32> to vector<8x128xbf16>
    %c1_185 = arith.constant 1 : index
    %c0_186 = arith.constant 0 : index
    %c0_187 = arith.constant 0 : index
    %234 = vector.load %arg9[%c1_185, %c0_186, %c0_187] : memref<2x8x128xbf16, #tpu.memory_space<vmem>>, vector<1x8x128xbf16>
    %235 = vector.shape_cast %234 : vector<1x8x128xbf16> to vector<8x128xbf16>
    %236 = vector.shape_cast %233 : vector<8x128xbf16> to vector<1x8x128xbf16>
    tpu.vector_store %arg9[%c1_185, %c0_186, %c0_187], %236 {strides = array<i32>} : memref<2x8x128xbf16, #tpu.memory_space<vmem>>, vector<1x8x128xbf16>,
    %237 = vector.broadcast %211 : i32 to vector<8x1xi32>
    %238 = arith.cmpi eq, %5, %237 : vector<8x1xi32>
    %c0_188 = arith.constant 0 : index
    %c0_189 = arith.constant 0 : index
    %239 = vector.load %arg10[%c0_188, %c0_189] : memref<8x128xbf16, #tpu.memory_space<vmem>>, vector<8x128xbf16>
    %240 = vector.shape_cast %238 : vector<8x1xi1> to vector<8x1xi1>
    %241 = vector.broadcast %240 : vector<8x1xi1> to vector<8x128xi1>
    %242 = arith.select %241, %233, %239 : vector<8x128xi1>, vector<8x128xbf16>
    %c0_190 = arith.constant 0 : index
    %c0_191 = arith.constant 0 : index
    %243 = vector.load %arg10[%c0_190, %c0_191] : memref<8x128xbf16, #tpu.memory_space<vmem>>, vector<8x128xbf16>
    tpu.vector_store %arg10[%c0_190, %c0_191], %242 {strides = array<i32>} : memref<8x128xbf16, #tpu.memory_space<vmem>>, vector<8x128xbf16>,
    %c8_i32_192 = arith.constant 8 : i32
    %244 = arith.muli %arg0, %c8_i32_192 : i32
    %c7_i32 = arith.constant 7 : i32
    %245 = arith.addi %244, %c7_i32 : i32
    %c7 = arith.constant 7 : index
    %c0_193 = arith.constant 0 : index
    %c0_194 = arith.constant 0 : index
    %246 = vector.load %arg2[%c7, %c0_193, %c0_194] : memref<8x8x128xf32, #tpu.memory_space<vmem>>, vector<1x8x128xf32>
    %247 = vector.shape_cast %246 : vector<1x8x128xf32> to vector<8x128xf32>
    %c0_195 = arith.constant 0 : index
    %c0_196 = arith.constant 0 : index
    %c0_197 = arith.constant 0 : index
    %248 = vector.load %arg9[%c0_195, %c0_196, %c0_197] : memref<2x8x128xbf16, #tpu.memory_space<vmem>>, vector<1x8x128xbf16>
    %249 = vector.shape_cast %248 : vector<1x8x128xbf16> to vector<8x128xbf16>
    %c0_198 = arith.constant 0 : index
    %c0_199 = arith.constant 0 : index
    %250 = vector.load %arg3[%c0_198, %c0_199] : memref<128x128xbf16, #tpu.memory_space<vmem>>, vector<128x128xbf16>
    %cst_200 = arith.constant dense<0.000000e+00> : vector<8x128xf32>
    %251 = tpu.matmul %249, %250, %cst_200 {dimension_numbers = #tpu.dot_dimension_numbers<[1], [0], [0], [1], [0, 0, 1, 1], [], []>} : vector<8x128xbf16>, vector<128x128xbf16>, vector<8x128xf32> -> vector<8x128xf32>
    %252 = arith.addf %247, %251 : vector<8x128xf32>
    %253 = math.tanh %252 : vector<8x128xf32>
    %254 = arith.truncf %253 : vector<8x128xf32> to vector<8x128xbf16>
    %c0_201 = arith.constant 0 : index
    %c0_202 = arith.constant 0 : index
    %c0_203 = arith.constant 0 : index
    %255 = vector.load %arg9[%c0_201, %c0_202, %c0_203] : memref<2x8x128xbf16, #tpu.memory_space<vmem>>, vector<1x8x128xbf16>
    %256 = vector.shape_cast %255 : vector<1x8x128xbf16> to vector<8x128xbf16>
    %257 = vector.shape_cast %254 : vector<8x128xbf16> to vector<1x8x128xbf16>
    tpu.vector_store %arg9[%c0_201, %c0_202, %c0_203], %257 {strides = array<i32>} : memref<2x8x128xbf16, #tpu.memory_space<vmem>>, vector<1x8x128xbf16>,
    %c1_204 = arith.constant 1 : index
    %c0_205 = arith.constant 0 : index
    %c0_206 = arith.constant 0 : index
    %258 = vector.load %arg9[%c1_204, %c0_205, %c0_206] : memref<2x8x128xbf16, #tpu.memory_space<vmem>>, vector<1x8x128xbf16>
    %259 = vector.shape_cast %258 : vector<1x8x128xbf16> to vector<8x128xbf16>
    %260 = tpu.concatenate %254, %259 in 1 : vector<8x128xbf16>, vector<8x128xbf16> -> vector<8x256xbf16>
    %c0_207 = arith.constant 0 : index
    %c0_208 = arith.constant 0 : index
    %261 = vector.load %arg4[%c0_207, %c0_208] : memref<256x128xbf16, #tpu.memory_space<vmem>>, vector<256x128xbf16>
    %cst_209 = arith.constant dense<0.000000e+00> : vector<8x128xf32>
    %262 = tpu.matmul %260, %261, %cst_209 {dimension_numbers = #tpu.dot_dimension_numbers<[1], [0], [0], [1], [0, 0, 1, 1], [], []>} : vector<8x256xbf16>, vector<256x128xbf16>, vector<8x128xf32> -> vector<8x128xf32>
    %c0_210 = arith.constant 0 : index
    %c0_211 = arith.constant 0 : index
    %263 = vector.load %arg5[%c0_210, %c0_211] : memref<1x128xf32, #tpu.memory_space<vmem>>, vector<1x128xf32>
    %264 = vector.broadcast %263 : vector<1x128xf32> to vector<8x128xf32>
    %265 = arith.addf %262, %264 : vector<8x128xf32>
    %266 = math.tanh %265 : vector<8x128xf32>
    %267 = arith.truncf %266 : vector<8x128xf32> to vector<8x128xbf16>
    %c1_212 = arith.constant 1 : index
    %c0_213 = arith.constant 0 : index
    %c0_214 = arith.constant 0 : index
    %268 = vector.load %arg9[%c1_212, %c0_213, %c0_214] : memref<2x8x128xbf16, #tpu.memory_space<vmem>>, vector<1x8x128xbf16>
    %269 = vector.shape_cast %268 : vector<1x8x128xbf16> to vector<8x128xbf16>
    %270 = vector.shape_cast %267 : vector<8x128xbf16> to vector<1x8x128xbf16>
    tpu.vector_store %arg9[%c1_212, %c0_213, %c0_214], %270 {strides = array<i32>} : memref<2x8x128xbf16, #tpu.memory_space<vmem>>, vector<1x8x128xbf16>,
    %271 = vector.broadcast %245 : i32 to vector<8x1xi32>
    %272 = arith.cmpi eq, %5, %271 : vector<8x1xi32>
    %c0_215 = arith.constant 0 : index
    %c0_216 = arith.constant 0 : index
    %273 = vector.load %arg10[%c0_215, %c0_216] : memref<8x128xbf16, #tpu.memory_space<vmem>>, vector<8x128xbf16>
    %274 = vector.shape_cast %272 : vector<8x1xi1> to vector<8x1xi1>
    %275 = vector.broadcast %274 : vector<8x1xi1> to vector<8x128xi1>
    %276 = arith.select %275, %267, %273 : vector<8x128xi1>, vector<8x128xbf16>
    %c0_217 = arith.constant 0 : index
    %c0_218 = arith.constant 0 : index
    %277 = vector.load %arg10[%c0_217, %c0_218] : memref<8x128xbf16, #tpu.memory_space<vmem>>, vector<8x128xbf16>
    tpu.vector_store %arg10[%c0_217, %c0_218], %276 {strides = array<i32>} : memref<8x128xbf16, #tpu.memory_space<vmem>>, vector<8x128xbf16>,
    %c0_i32_219 = arith.constant 0 : i32
    %278 = arith.cmpi eq, %arg0, %c0_i32_219 : i32
    %279 = arith.extui %278 : i1 to i32
    %c0_i32_220 = arith.constant 0 : i32
    %280 = arith.cmpi ne, %279, %c0_i32_220 : i32
    scf.if %280 {
      %c0_221 = arith.constant 0 : index
      %c0_222 = arith.constant 0 : index
      %281 = vector.load %arg10[%c0_221, %c0_222] : memref<8x128xbf16, #tpu.memory_space<vmem>>, vector<8x128xbf16>
      %c0_223 = arith.constant 0 : index
      %c0_224 = arith.constant 0 : index
      %282 = vector.load %arg6[%c0_223, %c0_224] : memref<128x128xbf16, #tpu.memory_space<vmem>>, vector<128x128xbf16>
      %cst_225 = arith.constant dense<0.000000e+00> : vector<8x128xf32>
      %283 = tpu.matmul %281, %282, %cst_225 {dimension_numbers = #tpu.dot_dimension_numbers<[1], [0], [0], [1], [0, 0, 1, 1], [], []>} : vector<8x128xbf16>, vector<128x128xbf16>, vector<8x128xf32> -> vector<8x128xf32>
      %c0_226 = arith.constant 0 : index
      %c0_227 = arith.constant 0 : index
      %284 = vector.load %arg7[%c0_226, %c0_227] : memref<1x128xf32, #tpu.memory_space<vmem>>, vector<1x128xf32>
      %285 = vector.broadcast %284 : vector<1x128xf32> to vector<8x128xf32>
      %286 = arith.addf %283, %285 : vector<8x128xf32>
      %c0_228 = arith.constant 0 : index
      %c0_229 = arith.constant 0 : index
      %287 = vector.load %arg8[%c0_228, %c0_229] : memref<8x128xf32, #tpu.memory_space<vmem>>, vector<8x128xf32>
      tpu.vector_store %arg8[%c0_228, %c0_229], %286 {strides = array<i32>} : memref<8x128xf32, #tpu.memory_space<vmem>>, vector<8x128xf32>,
    } else {
    }
    return
  }
  func.func @transform_0(%arg0: i32) -> (i32, i32) {
    %c0_i32 = arith.constant 0 : i32
    %c0_i32_0 = arith.constant 0 : i32
    %c0_i32_1 = arith.constant 0 : i32
    return %c0_i32, %c0_i32_0 : i32, i32
  }
  func.func @transform_1(%arg0: i32) -> (i32, i32, i32) {
    %c0_i32 = arith.constant 0 : i32
    %c0_i32_0 = arith.constant 0 : i32
    %c0_i32_1 = arith.constant 0 : i32
    return %arg0, %c0_i32, %c0_i32_0 : i32, i32, i32
  }
  func.func @transform_2(%arg0: i32) -> (i32, i32) {
    %c0_i32 = arith.constant 0 : i32
    %c0_i32_0 = arith.constant 0 : i32
    %c0_i32_1 = arith.constant 0 : i32
    return %c0_i32, %c0_i32_0 : i32, i32
  }
  func.func @transform_3(%arg0: i32) -> (i32, i32) {
    %c0_i32 = arith.constant 0 : i32
    %c0_i32_0 = arith.constant 0 : i32
    %c0_i32_1 = arith.constant 0 : i32
    return %c0_i32, %c0_i32_0 : i32, i32
  }
  func.func @transform_4(%arg0: i32) -> (i32, i32) {
    %c0_i32 = arith.constant 0 : i32
    %c0_i32_0 = arith.constant 0 : i32
    %c0_i32_1 = arith.constant 0 : i32
    return %c0_i32, %c0_i32_0 : i32, i32
  }
  func.func @transform_5(%arg0: i32) -> (i32, i32) {
    %c0_i32 = arith.constant 0 : i32
    %c0_i32_0 = arith.constant 0 : i32
    %c0_i32_1 = arith.constant 0 : i32
    return %c0_i32, %c0_i32_0 : i32, i32
  }
  func.func @transform_6(%arg0: i32) -> (i32, i32) {
    %c0_i32 = arith.constant 0 : i32
    %c0_i32_0 = arith.constant 0 : i32
    %c0_i32_1 = arith.constant 0 : i32
    return %c0_i32, %c0_i32_0 : i32, i32
  }
  func.func @transform_7(%arg0: i32) -> (i32, i32) {
    %c0_i32 = arith.constant 0 : i32
    %c0_i32_0 = arith.constant 0 : i32
    %c0_i32_1 = arith.constant 0 : i32
    return %c0_i32, %c0_i32_0 : i32, i32
  }
}

</mosaic_0001>

<bundles_post_ra>
// kernel: neg.1
= control target key start
LH: loop header
LB: loop body
LE: loop exit
PB: predicated region body
PF: predicated region fallthrough
CT: control target
= control target key end

     0   :  { %s24_s0 = inlined_call_operand.vmem [shape: s32[2], index: 0, kind: input, shape index: {}]   ;;  %s25_s1 = inlined_call_operand.vmem [shape: s32[2], index: 1, kind: output, shape index: {}]  }
   0x1   :  { %v2_v0 = vld [vmem:[%s24_s0] sm:$0x1] }
   0x2   :  { %v5_v1 = vsub.s32 0, %v2_v0 }
   0x4   :  { %7 = vst [vmem:[%s25_s1] sm:$0x1] %v5_v1 }

// kernel: speaker_rnn_forward.1
= control target key start
LH: loop header
LB: loop body
LE: loop exit
PB: predicated region body
PF: predicated region fallthrough
CT: control target
= control target key end

     0   :  { %v3463_v0 = vmov 0.0   ;;  %vm3464_vm0 = vmmov 0   ;;  %v3465_v2 = vmov 0   ;;  %s4270_s2 = inlined_call_operand.vmem [shape: bf16[128,128], index: 2, kind: input, shape index: {}]   ;;  %s4271_s3 = inlined_call_operand.vmem [shape: bf16[256,128], index: 3, kind: input, shape index: {}]   ;;  %s4272_s0 = inlined_call_operand.vmem [shape: s32[8,1], index: 0, kind: input, shape index: {}]   ;;  %s4273_s1 = inlined_call_operand.vmem [shape: f32[8,8,128], index: 1, kind: input, shape index: {}]   ;;  %s4274_s4 = inlined_call_operand.vmem [shape: f32[1,128], index: 4, kind: input, shape index: {}]   ;;  %s4275_s5 = inlined_call_operand.vmem [shape: bf16[128,128], index: 5, kind: input, shape index: {}]   ;;  %s4276_s6 = inlined_call_operand.vmem [shape: f32[1,128], index: 6, kind: input, shape index: {}]   ;;  %s4277_s7 = inlined_call_operand.vmem [shape: f32[8,128], index: 7, kind: output, shape index: {}]  }
   0x1   :  { %3046 = vmatprep.subr.bf16.mxu0 %v3463_v0  ;;  %v3231_v1 = vld [vmem:[%s4270_s2] sm:$0xff]   ;;  %3062 = vmatprep.mubr.msk.bf16.mxu0 %vm3464_vm0, %v3463_v0  ;;  %31 = vst [vmem:[#allocation2] sm:$0xf] %v3465_v2  ;;  %32 = vst [vmem:[#allocation2 + $0x4] sm:$0xf] %v3465_v2  ;;  %v3232_v3 = vld [vmem:[%s4270_s2 + $0x8] sm:$0xff]  }
   0x2   :  { %33 = vst [vmem:[#allocation3] sm:$0xf] %v3465_v2  ;;  %3229 = vset.pattern.permute.xlu0 %v3465_v2  ;;  %3230 = vset.pattern.permute.xlu1 %v3465_v2  ;;  %v3233_v4 = vld [vmem:[%s4270_s2 + $0x10] sm:$0xff]   ;;  %v3234_v5 = vld [vmem:[%s4270_s2 + $0x18] sm:$0xff]   ;;  %v3239_v6 = vld [vmem:[%s4271_s3 + $0x40] sm:$0xff]  }
   0x3   :  { %3047 = vmatpush3.bf16.msra.mxu0 %v3231_v1  ;;  %v3240_v7 = vld [vmem:[%s4271_s3] sm:$0xff]   ;;  %2798 = vmatprep.subr.bf16.mxu1 %v3239_v6  ;;  %v3241_v8 = vld [vmem:[%s4271_s3 + $0x48] sm:$0xff]   ;;  %v3243_v10 = vld [vmem:[%s4271_s3 + $0x50] sm:$0xff]  }
   0x4   :  { %3048 = vmatprep.subr.bf16.mxu0 %v3463_v0  ;;  %2799 = vmatpush3.bf16.msra.mxu1 %v3240_v7  ;;  %v3242_v9 = vld [vmem:[%s4271_s3 + $0x8] sm:$0xff]   ;;  %v3235_v11 = vld [vmem:[%s4270_s2 + $0x20] sm:$0xff]   ;;  %v3244_v12 = vld [vmem:[%s4271_s3 + $0x10] sm:$0xff]  }
   0x5   :  { %2800 = vmatprep.subr.bf16.mxu1 %v3241_v8  ;;  %v3246_v13 = vld [vmem:[%s4271_s3 + $0x58] sm:$0xff]   ;;  %v3236_v14 = vld [vmem:[%s4270_s2 + $0x28] sm:$0xff]   ;;  %v3237_v16 = vld [vmem:[%s4270_s2 + $0x30] sm:$0xff]  }
   0x6   :  { %v3247_v15 = vld [vmem:[%s4271_s3 + $0x18] sm:$0xff]   ;;  %v3245_v19 = vld [vmem:[%s4270_s2] sm:$0xff]   ;;  %v3248_v20 = vld [vmem:[%s4270_s2 + $0x8] sm:$0xff]  }
   0x7   :  { %3049 = vmatpush3.bf16.msra.mxu0 %v3232_v3  ;;  %v3238_v17 = vld [vmem:[%s4270_s2 + $0x38] sm:$0xff]   ;;  %v3249_v21 = vld [vmem:[%s4271_s3 + $0x60] sm:$0xff]   ;;  %v3251_v23 = vld [vmem:[%s4270_s2 + $0x10] sm:$0xff]  }
   0x8   :  { %3050 = vmatprep.subr.bf16.mxu0 %v3463_v0  ;;  %2801 = vmatpush3.bf16.msra.mxu1 %v3242_v9  ;;  %v38_v18 = vld [vmem:[#allocation2] sm:$0xf]  ;;  %v3252_v24 = vld [vmem:[%s4271_s3 + $0x68] sm:$0xff]   ;;  %v3254_v26 = vld [vmem:[%s4270_s2 + $0x18] sm:$0xff]  }
   0x9   :  { %2802 = vmatprep.subr.bf16.mxu1 %v3243_v10  ;;  %v3250_v22 = vld [vmem:[%s4271_s3 + $0x20] sm:$0xff]   ;;  %v3253_v25 = vld [vmem:[%s4271_s3 + $0x28] sm:$0xff]   ;;  %v3255_v27 = vld [vmem:[%s4271_s3 + $0x70] sm:$0xff]  }
   0xa   :  { %v3256_v28 = vld [vmem:[%s4271_s3 + $0x30] sm:$0xff]   ;;  %v3257_v29 = vld [vmem:[%s4270_s2 + $0x20] sm:$0xff]   ;;  %v3258_v30 = vld [vmem:[%s4271_s3 + $0x78] sm:$0xff]  }
   0xb   :  { %3051 = vmatpush3.bf16.msra.mxu0 %v3233_v4  ;;  %v3259_v31 = vld [vmem:[%s4271_s3 + $0x38] sm:$0xff]   ;;  %v3260_v32 = vld [vmem:[%s4270_s2 + $0x28] sm:$0xff]   ;;  %v148_v33 = vld [vmem:[#allocation2 + $0x4] sm:$0xf] }
   0xc   :  { %3052 = vmatprep.subr.bf16.mxu0 %v3463_v0  ;;  %2803 = vmatpush3.bf16.msra.mxu1 %v3244_v12  ;;  %v3261_v34 = vld [vmem:[%s4270_s2 + $0x30] sm:$0xff]   ;;  %v3262_v35 = vld [vmem:[%s4270_s2 + $0x38] sm:$0xff]   ;;  %v3263_v36 = vld [vmem:[%s4271_s3 + $0x40] sm:$0xff]  }
   0xd   :  { %2804 = vmatprep.subr.bf16.mxu1 %v3246_v13  ;;  %316 = vmatprep.mubr.bf16.mxu1 %v148_v33  ;;  %v34_v37 = vld [vmem:[%s4272_s0] sm:$0xff]  ;;  %v3265_v50 = vld [vmem:[%s4271_s3 + $0x48] sm:$0xff]   ;;  %v3268_v53 = vld [vmem:[%s4271_s3 + $0x50] sm:$0xff]  }
   0xe   :  { %v3634_v38 = vadd.s32 4294967295, %v34_v37  ;;  %v37_v40 = vld [vmem:[%s4273_s1] sm:$0xff]  ;;  %v3266_v51 = vld [vmem:[%s4271_s3 + $0x8] sm:$0xff]   ;;  %v3269_v54 = vld [vmem:[%s4271_s3 + $0x10] sm:$0xff]  }
   0xf   :  { %3053 = vmatpush3.bf16.msra.mxu0 %v3234_v5  ;;  %v3264_v47 = vld [vmem:[%s4271_s3] sm:$0xff]   ;;  %v3270_v55 = vld [vmem:[%s4270_s2 + $0x8] sm:$0xff]   ;;  %v3271_v56 = vld [vmem:[%s4271_s3 + $0x58] sm:$0xff]  }
  0x10   :  { %3054 = vmatprep.subr.bf16.mxu0 %v3463_v0  ;;  %2805 = vmatpush3.bf16.msra.mxu1 %v3247_v15  ;;  %vm328_vm1 = vcmp.eq.s32.totalorder %v3634_v38, 0  ;;  %v3267_v52 = vld [vmem:[%s4270_s2] sm:$0xff]   ;;  %v3272_v57 = vld [vmem:[%s4271_s3 + $0x18] sm:$0xff]   ;;  %v3273_v58 = vld [vmem:[%s4270_s2 + $0x10] sm:$0xff]   ;;  %vm630_vm2 = vcmp.eq.s32.totalorder %v3634_v38, 1  ;;  %vm932_vm5 = vcmp.eq.s32.totalorder %v3634_v38, 2 }
  0x11   :  { %2806 = vmatprep.subr.bf16.mxu1 %v3249_v21  ;;  %v330_v39 = vsel %vm328_vm1, 1, %v3465_v2  ;;  %v3274_v59 = vld [vmem:[%s4271_s3 + $0x60] sm:$0xff]   ;;  %v3276_v61 = vld [vmem:[%s4270_s2 + $0x18] sm:$0xff]   ;;  %v3277_v62 = vld [vmem:[%s4271_s3 + $0x68] sm:$0xff]   ;;  %vm1234_vm8 = vcmp.eq.s32.totalorder %v3634_v38, 3  ;;  %vm1536_vm11 = vcmp.eq.s32.totalorder %v3634_v38, 4 }
  0x12   :  { %332 = vperm.xlu0 %3229, %v330_v39   ;;  %v3275_v60 = vld [vmem:[%s4271_s3 + $0x20] sm:$0xff]   ;;  %v3278_v63 = vld [vmem:[%s4271_s3 + $0x28] sm:$0xff]   ;;  %v3280_v3 = vld [vmem:[%s4271_s3 + $0x70] sm:$0xff]   ;;  %vm1838_vm14 = vcmp.eq.s32.totalorder %v3634_v38, 5 }
  0x13   :  { %3055 = vmatpush3.bf16.msra.mxu0 %v3235_v11  ;;  %v3279_v1 = vld [vmem:[%s4270_s2 + $0x20] sm:$0xff]   ;;  %v3281_v4 = vld [vmem:[%s4271_s3 + $0x30] sm:$0xff]   ;;  %v3282_v5 = vld [vmem:[%s4270_s2 + $0x28] sm:$0xff]   ;;  %v632_v11 = vsel %vm630_vm2, 1, %v3465_v2  ;;  %vm2140_vm2 = vcmp.eq.s32.totalorder %v3634_v38, 6 }
  0x14   :  { %3056 = vmatprep.subr.bf16.mxu0 %v3463_v0  ;;  %2807 = vmatpush3.bf16.msra.mxu1 %v3250_v22  ;;  %v3283_v6 = vld [vmem:[%s4271_s3 + $0x78] sm:$0xff]   ;;  %v3285_v8 = vld [vmem:[%s4270_s2 + $0x30] sm:$0xff]   ;;  %v3287_v10 = vld [vmem:[%s4271_s3 + $0x40] sm:$0xff]  }
  0x15   :  { %2808 = vmatprep.subr.bf16.mxu1 %v3252_v24  ;;  %v3284_v7 = vld [vmem:[%s4271_s3 + $0x38] sm:$0xff]   ;;  %v3728_v13 = vld [vmem:[%s4274_s4] ss:$0 sm:$0xff]  ;;  %v3291_v37 = vld [vmem:[%s4271_s3 + $0x8] sm:$0xff]  }
  0x16   :  { %v3286_v9 = vld [vmem:[%s4270_s2 + $0x38] sm:$0xff]   ;;  %634 = vperm.xlu0 %3229, %v632_v11   ;;  %v3292_v39 = vld [vmem:[%s4270_s2 + $0x8] sm:$0xff]  }
  0x17   :  { %3057 = vmatpush3.bf16.msra.mxu0 %v3236_v14 }
  0x18   :  { %3058 = vmatprep.subr.bf16.mxu0 %v3463_v0  ;;  %2809 = vmatpush3.bf16.msra.mxu1 %v3253_v25 }
  0x19   :  { %2810 = vmatprep.subr.bf16.mxu1 %v3255_v27  ;;  %v329_v27 = vld [vmem:[#allocation3] sm:$0xf] }
  0x1b   :  { %3059 = vmatpush3.bf16.msra.mxu0 %v3237_v16 }
  0x1c   :  { %3060 = vmatprep.subr.bf16.mxu0 %v3463_v0  ;;  %2811 = vmatpush3.bf16.msra.mxu1 %v3256_v28 }
  0x1d   :  { %2812 = vmatprep.subr.bf16.mxu1 %v3258_v30 }
  0x1f   :  { %3061 = vmatpush3.bf16.msra.mxu0 %v3238_v17 }
  0x20   :  { %3066 = vmatprep.subr.bf16.mxu0 %v3463_v0  ;;  %2813 = vmatpush3.bf16.msra.mxu1 %v3259_v31 }
  0x21   :  { %2829 = vmatprep.subr.bf16.mxu1 %v3263_v36  ;;  %v3290_v36 = vld [vmem:[%s4271_s3 + $0x48] sm:$0xff]  }
  0x22   :  { %3063 = vmatmul.mubr.bf16.vlgmr.msra.gmra.mrb[0].mxu0 %v38_v18 }
  0x23   :  { %3067 = vmatpush3.bf16.msra.mxu0 %v3245_v19  ;;  %3082 = vmatprep.mubr.msk.bf16.mxu0 %vm3464_vm0, %v3463_v0  ;;  %v2598_v19 = vld [vmem:[%s4273_s1 + $0x8] sm:$0xff] }
  0x24   :  { %3068 = vmatprep.subr.bf16.mxu0 %v3463_v0 }
  0x27   :  { %3069 = vmatpush3.bf16.msra.mxu0 %v3248_v20 }
  0x28   :  { %3070 = vmatprep.subr.bf16.mxu0 %v3463_v0 }
  0x2b   :  { %3071 = vmatpush3.bf16.msra.mxu0 %v3251_v23 }
  0x2c   :  { %3072 = vmatprep.subr.bf16.mxu0 %v3463_v0 }
  0x2f   :  { %3073 = vmatpush3.bf16.msra.mxu0 %v3254_v26 }
  0x30   :  { %3074 = vmatprep.subr.bf16.mxu0 %v3463_v0 }
  0x33   :  { %3075 = vmatpush3.bf16.msra.mxu0 %v3257_v29 }
  0x34   :  { %3076 = vmatprep.subr.bf16.mxu0 %v3463_v0 }
  0x37   :  { %3077 = vmatpush3.bf16.msra.mxu0 %v3260_v32  ;;  %v3288_v32 = vld [vmem:[%s4271_s3] sm:$0xff]  }
  0x38   :  { %3078 = vmatprep.subr.bf16.mxu0 %v3463_v0 }
  0x3b   :  { %3079 = vmatpush3.bf16.msra.mxu0 %v3261_v34  ;;  %v3289_v34 = vld [vmem:[%s4270_s2] sm:$0xff]  }
  0x3c   :  { %3080 = vmatprep.subr.bf16.mxu0 %v3463_v0 }
  0x3f   :  { %3081 = vmatpush3.bf16.msra.mxu0 %v3262_v35 }
  0x40   :  { %3086 = vmatprep.subr.bf16.mxu0 %v3463_v0 }
  0x91   :  { %v333_v24 = vpop.permute.xlu0 %332 }
  0x92   :  { %vm334_vm3 = vcmp.eq.s32.totalorder %v333_v24, 1  ;;  %v3316_v24 = vld [vmem:[%s4271_s3 + $0x8] sm:$0xff]  }
  0x93   :  { %vm335_vm4 = vmpackc.low %vm334_vm3, %vm334_vm3 }
  0xf5   :  { %v137_v41 = vpop.f32.mrb[0].mxu0 }
  0xf6   :  { %v143_v42 = vadd.f32 %v137_v41, %v37_v40  ;;  %v3064_v43 = vpop.f32.mrb[1].mxu0  ;;  %v3293_v40 = vld [vmem:[%s4271_s3 + $0x50] sm:$0xff]  }
  0xf7   :  { %v140_v44 = vpop.f32.mrb[2].mxu0  ;;  %v3294_v41 = vld [vmem:[%s4271_s3 + $0x10] sm:$0xff]   ;;  %v3296_v43 = vld [vmem:[%s4271_s3 + $0x58] sm:$0xff]  }
  0xf8   :  { %3431 = vtanh.f32 %v143_v42  ;;  %v3065_v45 = vpop.f32.mrb[3].mxu0  ;;  %v3295_v42 = vld [vmem:[%s4270_s2 + $0x10] sm:$0xff]   ;;  %v3297_v44 = vld [vmem:[%s4271_s3 + $0x18] sm:$0xff]  }
  0xf9   :  { %v3298_v45 = vld [vmem:[%s4270_s2 + $0x18] sm:$0xff]  }
 0x102   :  { %v3432_v46 = vpop.eup %3431 }
 0x103   :  { %v145_v48 = vpack.c.bf16 %v3432_v46, %v3432_v46  ;;  %v3299_v46 = vld [vmem:[%s4271_s3 + $0x60] sm:$0xff]  }
 0x105   :  { %146 = vst [vmem:[#allocation2] sm:$0xf] %v145_v48  ;;  %317 = vmatmul.mubr.bf16.vlgmr.msra.gmra.mrb[0].mxu1 %v145_v48  ;;  %v3301_v48 = vld [vmem:[%s4270_s2 + $0x20] sm:$0xff]  }
 0x106   :  { %2830 = vmatpush3.bf16.msra.mxu1 %v3264_v47  ;;  %v3300_v47 = vld [vmem:[%s4271_s3 + $0x20] sm:$0xff]  }
 0x107   :  { %2831 = vmatprep.subr.bf16.mxu1 %v3265_v50  ;;  %v3303_v50 = vld [vmem:[%s4271_s3 + $0x28] sm:$0xff]  }
 0x10a   :  { %2832 = vmatpush3.bf16.msra.mxu1 %v3266_v51  ;;  %v3304_v51 = vld [vmem:[%s4270_s2 + $0x28] sm:$0xff]  }
 0x10b   :  { %2833 = vmatprep.subr.bf16.mxu1 %v3268_v53  ;;  %v3306_v53 = vld [vmem:[%s4271_s3 + $0x30] sm:$0xff]  }
 0x10c   :  { %v341_v49 = vld [vmem:[#allocation2] sm:$0xf] }
 0x10d   :  { %3083 = vmatmul.mubr.bf16.vlgmr.msra.gmra.mrb[4].mxu0 %v341_v49  ;;  %v3302_v49 = vld [vmem:[%s4271_s3 + $0x68] sm:$0xff]  }
 0x10e   :  { %3102 = vmatprep.mubr.msk.bf16.mxu0 %vm3464_vm0, %v3463_v0  ;;  %3087 = vmatpush3.bf16.msra.mxu0 %v3267_v52  ;;  %v3305_v52 = vld [vmem:[%s4271_s3 + $0x70] sm:$0xff]  }
 0x10f   :  { %3088 = vmatprep.subr.bf16.mxu0 %v3463_v0  ;;  %2834 = vmatpush3.bf16.msra.mxu1 %v3269_v54  ;;  %v3307_v54 = vld [vmem:[%s4270_s2 + $0x30] sm:$0xff]  }
 0x110   :  { %2835 = vmatprep.subr.bf16.mxu1 %v3271_v56  ;;  %v3309_v56 = vld [vmem:[%s4271_s3 + $0x38] sm:$0xff]  }
 0x112   :  { %3089 = vmatpush3.bf16.msra.mxu0 %v3270_v55  ;;  %v3308_v55 = vld [vmem:[%s4271_s3 + $0x78] sm:$0xff]  }
 0x113   :  { %3090 = vmatprep.subr.bf16.mxu0 %v3463_v0  ;;  %2836 = vmatpush3.bf16.msra.mxu1 %v3272_v57  ;;  %v3310_v57 = vld [vmem:[%s4270_s2 + $0x38] sm:$0xff]  }
 0x114   :  { %2837 = vmatprep.subr.bf16.mxu1 %v3274_v59  ;;  %v3312_v59 = vld [vmem:[%s4271_s3 + $0x40] sm:$0xff]  }
 0x116   :  { %3091 = vmatpush3.bf16.msra.mxu0 %v3273_v58  ;;  %v934_v58 = vsel %vm932_vm5, 1, %v3465_v2 }
 0x117   :  { %3092 = vmatprep.subr.bf16.mxu0 %v3463_v0  ;;  %2838 = vmatpush3.bf16.msra.mxu1 %v3275_v60 }
 0x118   :  { %2839 = vmatprep.subr.bf16.mxu1 %v3277_v62  ;;  %936 = vperm.xlu1 %3230, %v934_v58  }
 0x11a   :  { %3093 = vmatpush3.bf16.msra.mxu0 %v3276_v61 }
 0x11b   :  { %3094 = vmatprep.subr.bf16.mxu0 %v3463_v0  ;;  %2840 = vmatpush3.bf16.msra.mxu1 %v3278_v63 }
 0x11c   :  { %2841 = vmatprep.subr.bf16.mxu1 %v3280_v3 }
 0x11e   :  { %3095 = vmatpush3.bf16.msra.mxu0 %v3279_v1  ;;  %v2624_v1 = vld [vmem:[%s4273_s1 + $0x10] sm:$0xff] }
 0x11f   :  { %3096 = vmatprep.subr.bf16.mxu0 %v3463_v0  ;;  %2842 = vmatpush3.bf16.msra.mxu1 %v3281_v4 }
 0x120   :  { %2843 = vmatprep.subr.bf16.mxu1 %v3283_v6 }
 0x122   :  { %3097 = vmatpush3.bf16.msra.mxu0 %v3282_v5 }
 0x123   :  { %3098 = vmatprep.subr.bf16.mxu0 %v3463_v0  ;;  %2844 = vmatpush3.bf16.msra.mxu1 %v3284_v7 }
 0x124   :  { %2860 = vmatprep.subr.bf16.mxu1 %v3287_v10  ;;  %v635_v10 = vpop.permute.xlu0 %634 }
 0x125   :  { %vm636_vm6 = vcmp.eq.s32.totalorder %v635_v10, 1  ;;  %v3341_v10 = vld [vmem:[%s4271_s3 + $0x8] sm:$0xff]  }
 0x126   :  { %3099 = vmatpush3.bf16.msra.mxu0 %v3285_v8  ;;  %vm637_vm7 = vmpackc.low %vm636_vm6, %vm636_vm6 }
 0x127   :  { %3100 = vmatprep.subr.bf16.mxu0 %v3463_v0 }
 0x12a   :  { %3101 = vmatpush3.bf16.msra.mxu0 %v3286_v9 }
 0x12b   :  { %3106 = vmatprep.subr.bf16.mxu0 %v3463_v0 }
 0x1d8   :  { %v2814_v12 = vpop.f32.mrb[0].mxu1 }
 0x1d9   :  { %v2815_v14 = vpop.f32.mrb[1].mxu1 }
 0x1da   :  { %v2816_v15 = vadd.f32 %v2815_v14, %v2814_v12  ;;  %v2817_v16 = vpop.f32.mrb[2].mxu1 }
 0x1db   :  { %v2818_v17 = vpop.f32.mrb[3].mxu1 }
 0x1dc   :  { %v319_v18 = vadd.f32 %v2816_v15, %v3728_v13 }
 0x1de   :  { %3433 = vtanh.f32 %v319_v18  ;;  %v3311_v18 = vld [vmem:[%s4270_s2] sm:$0xff]  }
 0x1e0   :  { %v440_v20 = vpop.f32.mrb[4].mxu0 }
 0x1e1   :  { %v446_v21 = vadd.f32 %v2598_v19, %v440_v20  ;;  %v3084_v22 = vpop.f32.mrb[5].mxu0  ;;  %v3313_v19 = vld [vmem:[%s4271_s3] sm:$0xff]  }
 0x1e2   :  { %v443_v23 = vpop.f32.mrb[6].mxu0  ;;  %v3314_v22 = vld [vmem:[%s4270_s2 + $0x8] sm:$0xff]  }
 0x1e3   :  { %3435 = vtanh.f32 %v446_v21  ;;  %v3085_v25 = vpop.f32.mrb[7].mxu0  ;;  %v3315_v23 = vld [vmem:[%s4271_s3 + $0x48] sm:$0xff]  }
 0x1e4   :  { %v3317_v25 = vld [vmem:[%s4270_s2 + $0x10] sm:$0xff]  }
 0x1e8   :  { %v3434_v26 = vpop.eup %3433 }
 0x1e9   :  { %v325_v28 = vpack.c.bf16 %v3434_v26, %v3434_v26  ;;  %v3318_v26 = vld [vmem:[%s4271_s3 + $0x50] sm:$0xff]  }
 0x1eb   :  { %326 = vst [vmem:[#allocation2 + $0x4] sm:$0xf] %v325_v28  ;;  %v336_v29 = vsel %vm335_vm4, %v325_v28, %v329_v27  ;;  %v3319_v27 = vld [vmem:[%s4271_s3 + $0x10] sm:$0xff]   ;;  %v3320_v28 = vld [vmem:[%s4270_s2 + $0x18] sm:$0xff]  }
 0x1ec   :  { %337 = vst [vmem:[#allocation3] sm:$0xf] %v336_v29  ;;  %v3321_v29 = vld [vmem:[%s4271_s3 + $0x58] sm:$0xff]  }
 0x1ed   :  { %v3436_v30 = vpop.eup %3435 }
 0x1ee   :  { %v448_v31 = vpack.c.bf16 %v3436_v30, %v3436_v30  ;;  %v3322_v30 = vld [vmem:[%s4271_s3 + $0x18] sm:$0xff]  }
 0x1f0   :  { %449 = vst [vmem:[#allocation2] sm:$0xf] %v448_v31 }
 0x1f2   :  { %v450_v33 = vld [vmem:[#allocation2 + $0x4] sm:$0xf] }
 0x1f3   :  { %618 = vmatprep.mubr.bf16.mxu1 %v450_v33  ;;  %v631_v16 = vld [vmem:[#allocation3] sm:$0xf]  ;;  %v3325_v33 = vld [vmem:[%s4271_s3 + $0x20] sm:$0xff]  }
 0x1f4   :  { %619 = vmatmul.mubr.bf16.vlgmr.msra.gmra.mrb[4].mxu1 %v448_v31  ;;  %v3323_v31 = vld [vmem:[%s4270_s2 + $0x20] sm:$0xff]  }
 0x1f5   :  { %2861 = vmatpush3.bf16.msra.mxu1 %v3288_v32  ;;  %v3324_v32 = vld [vmem:[%s4271_s3 + $0x60] sm:$0xff]  }
 0x1f6   :  { %2862 = vmatprep.subr.bf16.mxu1 %v3290_v36  ;;  %v3328_v36 = vld [vmem:[%s4271_s3 + $0x28] sm:$0xff]  }
 0x1f7   :  { %v643_v35 = vld [vmem:[#allocation2] sm:$0xf] }
 0x1f8   :  { %3103 = vmatmul.mubr.bf16.vlgmr.msra.gmra.mrb[8].mxu0 %v643_v35  ;;  %v3327_v35 = vld [vmem:[%s4271_s3 + $0x68] sm:$0xff]  }
 0x1f9   :  { %3107 = vmatpush3.bf16.msra.mxu0 %v3289_v34  ;;  %3122 = vmatprep.mubr.msk.bf16.mxu0 %vm3464_vm0, %v3463_v0  ;;  %v3326_v34 = vld [vmem:[%s4270_s2 + $0x28] sm:$0xff]  }
 0x1fa   :  { %3108 = vmatprep.subr.bf16.mxu0 %v3463_v0  ;;  %2863 = vmatpush3.bf16.msra.mxu1 %v3291_v37  ;;  %v3329_v37 = vld [vmem:[%s4270_s2 + $0x30] sm:$0xff]  }
 0x1fb   :  { %2864 = vmatprep.subr.bf16.mxu1 %v3293_v40  ;;  %v3331_v40 = vld [vmem:[%s4271_s3 + $0x30] sm:$0xff]  }
 0x1fd   :  { %3109 = vmatpush3.bf16.msra.mxu0 %v3292_v39  ;;  %v3330_v39 = vld [vmem:[%s4271_s3 + $0x70] sm:$0xff]  }
 0x1fe   :  { %3110 = vmatprep.subr.bf16.mxu0 %v3463_v0  ;;  %2865 = vmatpush3.bf16.msra.mxu1 %v3294_v41  ;;  %v3332_v41 = vld [vmem:[%s4270_s2 + $0x38] sm:$0xff]  }
 0x1ff   :  { %2866 = vmatprep.subr.bf16.mxu1 %v3296_v43  ;;  %v3334_v43 = vld [vmem:[%s4271_s3 + $0x38] sm:$0xff]  }
 0x201   :  { %3111 = vmatpush3.bf16.msra.mxu0 %v3295_v42  ;;  %v3333_v42 = vld [vmem:[%s4271_s3 + $0x78] sm:$0xff]  }
 0x202   :  { %3112 = vmatprep.subr.bf16.mxu0 %v3463_v0  ;;  %2867 = vmatpush3.bf16.msra.mxu1 %v3297_v44  ;;  %v1236_v44 = vsel %vm1234_vm8, 1, %v3465_v2 }
 0x203   :  { %2868 = vmatprep.subr.bf16.mxu1 %v3299_v46  ;;  %1238 = vperm.xlu1 %3230, %v1236_v44  }
 0x205   :  { %3113 = vmatpush3.bf16.msra.mxu0 %v3298_v45  ;;  %v2650_v45 = vld [vmem:[%s4273_s1 + $0x18] sm:$0xff] }
 0x206   :  { %3114 = vmatprep.subr.bf16.mxu0 %v3463_v0  ;;  %2869 = vmatpush3.bf16.msra.mxu1 %v3300_v47 }
 0x207   :  { %2870 = vmatprep.subr.bf16.mxu1 %v3302_v49 }
 0x209   :  { %3115 = vmatpush3.bf16.msra.mxu0 %v3301_v48 }
 0x20a   :  { %3116 = vmatprep.subr.bf16.mxu0 %v3463_v0  ;;  %2871 = vmatpush3.bf16.msra.mxu1 %v3303_v50 }
 0x20b   :  { %2872 = vmatprep.subr.bf16.mxu1 %v3305_v52 }
 0x20d   :  { %3117 = vmatpush3.bf16.msra.mxu0 %v3304_v51 }
 0x20e   :  { %3118 = vmatprep.subr.bf16.mxu0 %v3463_v0  ;;  %2873 = vmatpush3.bf16.msra.mxu1 %v3306_v53 }
 0x20f   :  { %2874 = vmatprep.subr.bf16.mxu1 %v3308_v55 }
 0x211   :  { %3119 = vmatpush3.bf16.msra.mxu0 %v3307_v54 }
 0x212   :  { %3120 = vmatprep.subr.bf16.mxu0 %v3463_v0  ;;  %2875 = vmatpush3.bf16.msra.mxu1 %v3309_v56 }
 0x213   :  { %2891 = vmatprep.subr.bf16.mxu1 %v3312_v59 }
 0x215   :  { %3121 = vmatpush3.bf16.msra.mxu0 %v3310_v57  ;;  %v937_v57 = vpop.permute.xlu1 %936 }
 0x216   :  { %3126 = vmatprep.subr.bf16.mxu0 %v3463_v0  ;;  %vm938_vm9 = vcmp.eq.s32.totalorder %v937_v57, 1  ;;  %v3365_v57 = vld [vmem:[%s4271_s3 + $0x48] sm:$0xff]  }
 0x217   :  { %vm939_vm10 = vmpackc.low %vm938_vm9, %vm938_vm9 }
 0x2c7   :  { %v2845_v60 = vpop.f32.mrb[4].mxu1 }
 0x2c8   :  { %v2846_v61 = vpop.f32.mrb[5].mxu1 }
 0x2c9   :  { %v2847_v62 = vadd.f32 %v2846_v61, %v2845_v60  ;;  %v2848_v63 = vpop.f32.mrb[6].mxu1 }
 0x2ca   :  { %v2849_v3 = vpop.f32.mrb[7].mxu1 }
 0x2cb   :  { %v621_v4 = vadd.f32 %v2847_v62, %v3728_v13  ;;  %v742_v5 = vpop.f32.mrb[8].mxu0 }
 0x2cc   :  { %v748_v6 = vadd.f32 %v2624_v1, %v742_v5  ;;  %v3104_v7 = vpop.f32.mrb[9].mxu0  ;;  %v3335_v1 = vld [vmem:[%s4270_s2] sm:$0xff]  }
 0x2cd   :  { %3437 = vtanh.f32 %v621_v4  ;;  %v745_v8 = vpop.f32.mrb[10].mxu0  ;;  %v3336_v4 = vld [vmem:[%s4270_s2 + $0x8] sm:$0xff]   ;;  %v3338_v7 = vld [vmem:[%s4271_s3] sm:$0xff]  }
 0x2ce   :  { %3439 = vtanh.f32 %v748_v6  ;;  %v3105_v9 = vpop.f32.mrb[11].mxu0  ;;  %v3337_v6 = vld [vmem:[%s4271_s3 + $0x40] sm:$0xff]   ;;  %v3339_v8 = vld [vmem:[%s4270_s2 + $0x10] sm:$0xff]  }
 0x2cf   :  { %v3340_v9 = vld [vmem:[%s4271_s3 + $0x48] sm:$0xff]  }
 0x2d7   :  { %v3438_v11 = vpop.eup %3437 }
 0x2d8   :  { %v3440_v12 = vpop.eup %3439  ;;  %v627_v14 = vpack.c.bf16 %v3438_v11, %v3438_v11  ;;  %v3342_v11 = vld [vmem:[%s4270_s2 + $0x18] sm:$0xff]  }
 0x2d9   :  { %v750_v15 = vpack.c.bf16 %v3440_v12, %v3440_v12  ;;  %v3343_v12 = vld [vmem:[%s4271_s3 + $0x50] sm:$0xff]  }
 0x2da   :  { %628 = vst [vmem:[#allocation2 + $0x4] sm:$0xf] %v627_v14  ;;  %v638_v17 = vsel %vm637_vm7, %v627_v14, %v631_v16  ;;  %v3344_v14 = vld [vmem:[%s4271_s3 + $0x10] sm:$0xff]   ;;  %v3346_v16 = vld [vmem:[%s4271_s3 + $0x58] sm:$0xff]  }
 0x2db   :  { %751 = vst [vmem:[#allocation2] sm:$0xf] %v750_v15  ;;  %639 = vst [vmem:[#allocation3] sm:$0xf] %v638_v17  ;;  %v3347_v17 = vld [vmem:[%s4271_s3 + $0x18] sm:$0xff]  }
 0x2e1   :  { %v752_v20 = vld [vmem:[#allocation2 + $0x4] sm:$0xf] }
 0x2e2   :  { %920 = vmatprep.mubr.bf16.mxu1 %v752_v20  ;;  %v945_v21 = vld [vmem:[#allocation2] sm:$0xf]  ;;  %v933_v62 = vld [vmem:[#allocation3] sm:$0xf] }
 0x2e3   :  { %921 = vmatmul.mubr.bf16.vlgmr.msra.gmra.mrb[8].mxu1 %v750_v15  ;;  %3123 = vmatmul.mubr.bf16.vlgmr.msra.gmra.mrb[12].mxu0 %v945_v21  ;;  %v3345_v15 = vld [vmem:[%s4270_s2 + $0x20] sm:$0xff]   ;;  %v3351_v21 = vld [vmem:[%s4270_s2 + $0x30] sm:$0xff]  }
 0x2e4   :  { %3127 = vmatpush3.bf16.msra.mxu0 %v3311_v18  ;;  %2892 = vmatpush3.bf16.msra.mxu1 %v3313_v19  ;;  %v3348_v18 = vld [vmem:[%s4270_s2 + $0x28] sm:$0xff]   ;;  %v3349_v19 = vld [vmem:[%s4271_s3 + $0x60] sm:$0xff]  }
 0x2e5   :  { %3128 = vmatprep.subr.bf16.mxu0 %v3463_v0  ;;  %3142 = vmatprep.mubr.msk.bf16.mxu0 %vm3464_vm0, %v3463_v0  ;;  %v3350_v20 = vld [vmem:[%s4271_s3 + $0x20] sm:$0xff]  }
 0x2e6   :  { %2893 = vmatprep.subr.bf16.mxu1 %v3315_v23  ;;  %v3353_v23 = vld [vmem:[%s4271_s3 + $0x28] sm:$0xff]  }
 0x2e8   :  { %3129 = vmatpush3.bf16.msra.mxu0 %v3314_v22  ;;  %2894 = vmatpush3.bf16.msra.mxu1 %v3316_v24  ;;  %v3352_v22 = vld [vmem:[%s4271_s3 + $0x68] sm:$0xff]   ;;  %v3354_v24 = vld [vmem:[%s4270_s2 + $0x38] sm:$0xff]  }
 0x2e9   :  { %3130 = vmatprep.subr.bf16.mxu0 %v3463_v0  ;;  %2895 = vmatprep.subr.bf16.mxu1 %v3318_v26  ;;  %v3356_v26 = vld [vmem:[%s4271_s3 + $0x30] sm:$0xff]  }
 0x2ec   :  { %3131 = vmatpush3.bf16.msra.mxu0 %v3317_v25  ;;  %2896 = vmatpush3.bf16.msra.mxu1 %v3319_v27  ;;  %v3355_v25 = vld [vmem:[%s4271_s3 + $0x70] sm:$0xff]   ;;  %v3357_v27 = vld [vmem:[%s4271_s3 + $0x78] sm:$0xff]  }
 0x2ed   :  { %3132 = vmatprep.subr.bf16.mxu0 %v3463_v0  ;;  %2897 = vmatprep.subr.bf16.mxu1 %v3321_v29  ;;  %v1538_v29 = vsel %vm1536_vm11, 1, %v3465_v2 }
 0x2ee   :  { %1540 = vperm.xlu0 %3229, %v1538_v29  }
 0x2f0   :  { %3133 = vmatpush3.bf16.msra.mxu0 %v3320_v28  ;;  %2898 = vmatpush3.bf16.msra.mxu1 %v3322_v30  ;;  %v3358_v28 = vld [vmem:[%s4271_s3 + $0x38] sm:$0xff]   ;;  %v2676_v30 = vld [vmem:[%s4273_s1 + $0x20] sm:$0xff] }
 0x2f1   :  { %3134 = vmatprep.subr.bf16.mxu0 %v3463_v0  ;;  %2899 = vmatprep.subr.bf16.mxu1 %v3324_v32 }
 0x2f4   :  { %3135 = vmatpush3.bf16.msra.mxu0 %v3323_v31  ;;  %2900 = vmatpush3.bf16.msra.mxu1 %v3325_v33 }
 0x2f5   :  { %3136 = vmatprep.subr.bf16.mxu0 %v3463_v0  ;;  %2901 = vmatprep.subr.bf16.mxu1 %v3327_v35 }
 0x2f8   :  { %3137 = vmatpush3.bf16.msra.mxu0 %v3326_v34  ;;  %2902 = vmatpush3.bf16.msra.mxu1 %v3328_v36 }
 0x2f9   :  { %3138 = vmatprep.subr.bf16.mxu0 %v3463_v0  ;;  %2903 = vmatprep.subr.bf16.mxu1 %v3330_v39 }
 0x2fc   :  { %3139 = vmatpush3.bf16.msra.mxu0 %v3329_v37  ;;  %2904 = vmatpush3.bf16.msra.mxu1 %v3331_v40 }
 0x2fd   :  { %3140 = vmatprep.subr.bf16.mxu0 %v3463_v0  ;;  %2905 = vmatprep.subr.bf16.mxu1 %v3333_v42 }
 0x300   :  { %3141 = vmatpush3.bf16.msra.mxu0 %v3332_v41  ;;  %2906 = vmatpush3.bf16.msra.mxu1 %v3334_v43 }
 0x301   :  { %3146 = vmatprep.subr.bf16.mxu0 %v3463_v0  ;;  %2922 = vmatprep.subr.bf16.mxu1 %v3337_v6  ;;  %v3376_v6 = vld [vmem:[%s4270_s2 + $0x38] sm:$0xff]  }
 0x3b6   :  { %v2876_v46 = vpop.f32.mrb[8].mxu1  ;;  %v1044_v47 = vpop.f32.mrb[12].mxu0 }
 0x3b7   :  { %v1050_v48 = vadd.f32 %v2650_v45, %v1044_v47  ;;  %v2877_v49 = vpop.f32.mrb[9].mxu1  ;;  %v3124_v50 = vpop.f32.mrb[13].mxu0 }
 0x3b8   :  { %v2878_v51 = vadd.f32 %v2877_v49, %v2876_v46  ;;  %v2879_v52 = vpop.f32.mrb[10].mxu1  ;;  %v1047_v53 = vpop.f32.mrb[14].mxu0 }
 0x3b9   :  { %3441 = vtanh.f32 %v1050_v48  ;;  %v2880_v54 = vpop.f32.mrb[11].mxu1  ;;  %v3125_v55 = vpop.f32.mrb[15].mxu0  ;;  %v3359_v48 = vld [vmem:[%s4270_s2] sm:$0xff]   ;;  %v3361_v53 = vld [vmem:[%s4270_s2 + $0x10] sm:$0xff]  }
 0x3ba   :  { %v923_v56 = vadd.f32 %v2878_v51, %v3728_v13  ;;  %v1239_v45 = vpop.permute.xlu1 %1238  ;;  %v3362_v54 = vld [vmem:[%s4271_s3 + $0x40] sm:$0xff]  }
 0x3bb   :  { %vm1240_vm12 = vcmp.eq.s32.totalorder %v1239_v45, 1  ;;  %v3363_v55 = vld [vmem:[%s4271_s3] sm:$0xff]   ;;  %v3390_v45 = vld [vmem:[%s4271_s3 + $0x48] sm:$0xff]  }
 0x3bc   :  { %3443 = vtanh.f32 %v923_v56  ;;  %vm1241_vm13 = vmpackc.low %vm1240_vm12, %vm1240_vm12  ;;  %v3364_v56 = vld [vmem:[%s4270_s2 + $0x18] sm:$0xff]  }
 0x3c3   :  { %v3442_v58 = vpop.eup %3441 }
 0x3c4   :  { %v1052_v59 = vpack.c.bf16 %v3442_v58, %v3442_v58  ;;  %v3366_v58 = vld [vmem:[%s4271_s3 + $0x8] sm:$0xff]  }
 0x3c6   :  { %v3444_v60 = vpop.eup %3443  ;;  %1053 = vst [vmem:[#allocation2] sm:$0xf] %v1052_v59 }
 0x3c7   :  { %v929_v61 = vpack.c.bf16 %v3444_v60, %v3444_v60  ;;  %v3368_v60 = vld [vmem:[%s4271_s3 + $0x50] sm:$0xff]  }
 0x3c9   :  { %930 = vst [vmem:[#allocation2 + $0x4] sm:$0xf] %v929_v61  ;;  %v940_v63 = vsel %vm939_vm10, %v929_v61, %v933_v62  ;;  %v3369_v61 = vld [vmem:[%s4271_s3 + $0x10] sm:$0xff]   ;;  %v3370_v62 = vld [vmem:[%s4270_s2 + $0x28] sm:$0xff]  }
 0x3ca   :  { %941 = vst [vmem:[#allocation3] sm:$0xf] %v940_v63  ;;  %v3371_v63 = vld [vmem:[%s4271_s3 + $0x58] sm:$0xff]  }
 0x3cd   :  { %v1247_v3 = vld [vmem:[#allocation2] sm:$0xf] }
 0x3ce   :  { %3143 = vmatmul.mubr.bf16.vlgmr.msra.gmra.mrb[16].mxu0 %v1247_v3  ;;  %v3373_v3 = vld [vmem:[%s4270_s2 + $0x30] sm:$0xff]  }
 0x3cf   :  { %3147 = vmatpush3.bf16.msra.mxu0 %v3335_v1  ;;  %3162 = vmatprep.mubr.msk.bf16.mxu0 %vm3464_vm0, %v3463_v0  ;;  %v3372_v1 = vld [vmem:[%s4271_s3 + $0x18] sm:$0xff]  }
 0x3d0   :  { %v1054_v5 = vld [vmem:[#allocation2 + $0x4] sm:$0xf]  ;;  %3148 = vmatprep.subr.bf16.mxu0 %v3463_v0 }
 0x3d1   :  { %1222 = vmatprep.mubr.bf16.mxu1 %v1054_v5  ;;  %v1235_v49 = vld [vmem:[#allocation3] sm:$0xf]  ;;  %v3375_v5 = vld [vmem:[%s4271_s3 + $0x20] sm:$0xff]  }
 0x3d2   :  { %1223 = vmatmul.mubr.bf16.vlgmr.msra.gmra.mrb[12].mxu1 %v1052_v59  ;;  %v3367_v59 = vld [vmem:[%s4270_s2 + $0x20] sm:$0xff]  }
 0x3d3   :  { %3149 = vmatpush3.bf16.msra.mxu0 %v3336_v4  ;;  %2923 = vmatpush3.bf16.msra.mxu1 %v3338_v7  ;;  %v3374_v4 = vld [vmem:[%s4271_s3 + $0x60] sm:$0xff]   ;;  %v3377_v7 = vld [vmem:[%s4271_s3 + $0x68] sm:$0xff]  }
 0x3d4   :  { %3150 = vmatprep.subr.bf16.mxu0 %v3463_v0  ;;  %2924 = vmatprep.subr.bf16.mxu1 %v3340_v9  ;;  %v3379_v9 = vld [vmem:[%s4271_s3 + $0x70] sm:$0xff]  }
 0x3d7   :  { %3151 = vmatpush3.bf16.msra.mxu0 %v3339_v8  ;;  %2925 = vmatpush3.bf16.msra.mxu1 %v3341_v10  ;;  %v3378_v8 = vld [vmem:[%s4271_s3 + $0x28] sm:$0xff]   ;;  %v3380_v10 = vld [vmem:[%s4271_s3 + $0x30] sm:$0xff]  }
 0x3d8   :  { %3152 = vmatprep.subr.bf16.mxu0 %v3463_v0  ;;  %2926 = vmatprep.subr.bf16.mxu1 %v3343_v12  ;;  %v3382_v12 = vld [vmem:[%s4271_s3 + $0x38] sm:$0xff]  }
 0x3db   :  { %3153 = vmatpush3.bf16.msra.mxu0 %v3342_v11  ;;  %2927 = vmatpush3.bf16.msra.mxu1 %v3344_v14  ;;  %v3381_v11 = vld [vmem:[%s4271_s3 + $0x78] sm:$0xff]   ;;  %v1840_v14 = vsel %vm1838_vm14, 1, %v3465_v2 }
 0x3dc   :  { %3154 = vmatprep.subr.bf16.mxu0 %v3463_v0  ;;  %2928 = vmatprep.subr.bf16.mxu1 %v3346_v16 }
 0x3dd   :  { %1842 = vperm.xlu1 %3230, %v1840_v14  }
 0x3df   :  { %3155 = vmatpush3.bf16.msra.mxu0 %v3345_v15  ;;  %2929 = vmatpush3.bf16.msra.mxu1 %v3347_v17  ;;  %v2702_v15 = vld [vmem:[%s4273_s1 + $0x28] sm:$0xff] }
 0x3e0   :  { %3156 = vmatprep.subr.bf16.mxu0 %v3463_v0  ;;  %2930 = vmatprep.subr.bf16.mxu1 %v3349_v19 }
 0x3e3   :  { %3157 = vmatpush3.bf16.msra.mxu0 %v3348_v18  ;;  %2931 = vmatpush3.bf16.msra.mxu1 %v3350_v20 }
 0x3e4   :  { %3158 = vmatprep.subr.bf16.mxu0 %v3463_v0  ;;  %2932 = vmatprep.subr.bf16.mxu1 %v3352_v22  ;;  %v4085_v22 = vld [vmem:[%s4274_s4] ss:$0 sm:$0xff] }
 0x3e7   :  { %3159 = vmatpush3.bf16.msra.mxu0 %v3351_v21  ;;  %2933 = vmatpush3.bf16.msra.mxu1 %v3353_v23 }
 0x3e8   :  { %3160 = vmatprep.subr.bf16.mxu0 %v3463_v0  ;;  %2934 = vmatprep.subr.bf16.mxu1 %v3355_v25 }
 0x3eb   :  { %3161 = vmatpush3.bf16.msra.mxu0 %v3354_v24  ;;  %2935 = vmatpush3.bf16.msra.mxu1 %v3356_v26 }
 0x3ec   :  { %3166 = vmatprep.subr.bf16.mxu0 %v3463_v0  ;;  %2936 = vmatprep.subr.bf16.mxu1 %v3357_v27 }
 0x3ef   :  { %2937 = vmatpush3.bf16.msra.mxu1 %v3358_v28 }
 0x3f0   :  { %2953 = vmatprep.subr.bf16.mxu1 %v3362_v54  ;;  %v3400_v54 = vld [vmem:[%s4271_s3 + $0x20] sm:$0xff]  }
 0x4a1   :  { %v1346_v31 = vpop.f32.mrb[16].mxu0 }
 0x4a2   :  { %v1352_v32 = vadd.f32 %v2676_v30, %v1346_v31  ;;  %v3144_v33 = vpop.f32.mrb[17].mxu0  ;;  %v1541_v30 = vpop.permute.xlu0 %1540  ;;  %v3383_v31 = vld [vmem:[%s4270_s2] sm:$0xff]  }
 0x4a3   :  { %v1349_v34 = vpop.f32.mrb[18].mxu0  ;;  %vm1542_vm15 = vcmp.eq.s32.totalorder %v1541_v30, 1  ;;  %v3414_v30 = vld [vmem:[%s4271_s3 + $0x18] sm:$0xff]  }
 0x4a4   :  { %3445 = vtanh.f32 %v1352_v32  ;;  %v3145_v35 = vpop.f32.mrb[19].mxu0  ;;  %vm1543_vm1 = vmpackc.low %vm1542_vm15, %vm1542_vm15 }
 0x4a5   :  { %v2907_v36 = vpop.f32.mrb[12].mxu1  ;;  %v3384_v35 = vld [vmem:[%s4270_s2 + $0x8] sm:$0xff]  }
 0x4a6   :  { %v2908_v37 = vpop.f32.mrb[13].mxu1 }
 0x4a7   :  { %v2909_v39 = vadd.f32 %v2908_v37, %v2907_v36  ;;  %v2910_v40 = vpop.f32.mrb[14].mxu1 }
 0x4a8   :  { %v2911_v41 = vpop.f32.mrb[15].mxu1  ;;  %v3385_v40 = vld [vmem:[%s4270_s2 + $0x10] sm:$0xff]  }
 0x4a9   :  { %v1225_v42 = vadd.f32 %v2909_v39, %v3728_v13  ;;  %v3360_v13 = vld [vmem:[%s4270_s2 + $0x8] sm:$0xff]   ;;  %v3386_v41 = vld [vmem:[%s4270_s2 + $0x18] sm:$0xff]  }
 0x4ab   :  { %3447 = vtanh.f32 %v1225_v42  ;;  %v3387_v42 = vld [vmem:[%s4271_s3 + $0x40] sm:$0xff]  }
 0x4ae   :  { %v3446_v43 = vpop.eup %3445 }
 0x4af   :  { %v1354_v44 = vpack.c.bf16 %v3446_v43, %v3446_v43  ;;  %v3388_v43 = vld [vmem:[%s4271_s3] sm:$0xff]  }
 0x4b1   :  { %1355 = vst [vmem:[#allocation2] sm:$0xf] %v1354_v44 }
 0x4b5   :  { %v3448_v46 = vpop.eup %3447 }
 0x4b6   :  { %v1231_v47 = vpack.c.bf16 %v3448_v46, %v3448_v46  ;;  %v3391_v46 = vld [vmem:[%s4271_s3 + $0x8] sm:$0xff]  }
 0x4b8   :  { %1232 = vst [vmem:[#allocation2 + $0x4] sm:$0xf] %v1231_v47  ;;  %v1242_v50 = vsel %vm1241_vm13, %v1231_v47, %v1235_v49  ;;  %v1549_v51 = vld [vmem:[#allocation2] sm:$0xf]  ;;  %v3392_v47 = vld [vmem:[%s4270_s2 + $0x28] sm:$0xff]   ;;  %v3394_v49 = vld [vmem:[%s4271_s3 + $0x10] sm:$0xff]  }
 0x4b9   :  { %1243 = vst [vmem:[#allocation3] sm:$0xf] %v1242_v50  ;;  %3163 = vmatmul.mubr.bf16.vlgmr.msra.gmra.mrb[20].mxu0 %v1549_v51  ;;  %v3395_v50 = vld [vmem:[%s4270_s2 + $0x30] sm:$0xff]   ;;  %v3396_v51 = vld [vmem:[%s4271_s3 + $0x58] sm:$0xff]  }
 0x4ba   :  { %3167 = vmatpush3.bf16.msra.mxu0 %v3359_v48  ;;  %3182 = vmatprep.mubr.msk.bf16.mxu0 %vm3464_vm0, %v3463_v0  ;;  %v3393_v48 = vld [vmem:[%s4271_s3 + $0x50] sm:$0xff]  }
 0x4bb   :  { %3168 = vmatprep.subr.bf16.mxu0 %v3463_v0 }
 0x4be   :  { %3169 = vmatpush3.bf16.msra.mxu0 %v3360_v13  ;;  %v3397_v13 = vld [vmem:[%s4271_s3 + $0x18] sm:$0xff]  }
 0x4bf   :  { %v1356_v52 = vld [vmem:[#allocation2 + $0x4] sm:$0xf]  ;;  %3170 = vmatprep.subr.bf16.mxu0 %v3463_v0 }
 0x4c0   :  { %1524 = vmatprep.mubr.bf16.mxu1 %v1356_v52  ;;  %v1537_v36 = vld [vmem:[#allocation3] sm:$0xf]  ;;  %v3398_v52 = vld [vmem:[%s4270_s2 + $0x38] sm:$0xff]  }
 0x4c1   :  { %1525 = vmatmul.mubr.bf16.vlgmr.msra.gmra.mrb[16].mxu1 %v1354_v44  ;;  %v3389_v44 = vld [vmem:[%s4270_s2 + $0x20] sm:$0xff]  }
 0x4c2   :  { %3171 = vmatpush3.bf16.msra.mxu0 %v3361_v53  ;;  %2954 = vmatpush3.bf16.msra.mxu1 %v3363_v55  ;;  %v3399_v53 = vld [vmem:[%s4271_s3 + $0x60] sm:$0xff]   ;;  %v3401_v55 = vld [vmem:[%s4271_s3 + $0x68] sm:$0xff]  }
 0x4c3   :  { %3172 = vmatprep.subr.bf16.mxu0 %v3463_v0  ;;  %2955 = vmatprep.subr.bf16.mxu1 %v3365_v57  ;;  %v3403_v57 = vld [vmem:[%s4271_s3 + $0x70] sm:$0xff]  }
 0x4c6   :  { %3173 = vmatpush3.bf16.msra.mxu0 %v3364_v56  ;;  %2956 = vmatpush3.bf16.msra.mxu1 %v3366_v58  ;;  %v3402_v56 = vld [vmem:[%s4271_s3 + $0x28] sm:$0xff]   ;;  %v3404_v58 = vld [vmem:[%s4271_s3 + $0x30] sm:$0xff]  }
 0x4c7   :  { %3174 = vmatprep.subr.bf16.mxu0 %v3463_v0  ;;  %2957 = vmatprep.subr.bf16.mxu1 %v3368_v60  ;;  %v3406_v60 = vld [vmem:[%s4271_s3 + $0x38] sm:$0xff]  }
 0x4ca   :  { %3175 = vmatpush3.bf16.msra.mxu0 %v3367_v59  ;;  %2958 = vmatpush3.bf16.msra.mxu1 %v3369_v61  ;;  %v3405_v59 = vld [vmem:[%s4271_s3 + $0x78] sm:$0xff]   ;;  %v2142_v61 = vsel %vm2140_vm2, 1, %v3465_v2 }
 0x4cb   :  { %3176 = vmatprep.subr.bf16.mxu0 %v3463_v0  ;;  %2959 = vmatprep.subr.bf16.mxu1 %v3371_v63 }
 0x4cc   :  { %2144 = vperm.xlu0 %3229, %v2142_v61   ;;  %v3426_v61 = vld [vmem:[%s4275_s5 + $0x18] sm:$0xff]  }
 0x4ce   :  { %3177 = vmatpush3.bf16.msra.mxu0 %v3370_v62  ;;  %2960 = vmatpush3.bf16.msra.mxu1 %v3372_v1  ;;  %v2728_v62 = vld [vmem:[%s4273_s1 + $0x30] sm:$0xff] }
 0x4cf   :  { %3178 = vmatprep.subr.bf16.mxu0 %v3463_v0  ;;  %2961 = vmatprep.subr.bf16.mxu1 %v3374_v4 }
 0x4d2   :  { %3179 = vmatpush3.bf16.msra.mxu0 %v3373_v3  ;;  %2962 = vmatpush3.bf16.msra.mxu1 %v3375_v5 }
 0x4d3   :  { %3180 = vmatprep.subr.bf16.mxu0 %v3463_v0  ;;  %2963 = vmatprep.subr.bf16.mxu1 %v3377_v7 }
 0x4d6   :  { %3181 = vmatpush3.bf16.msra.mxu0 %v3376_v6  ;;  %2964 = vmatpush3.bf16.msra.mxu1 %v3378_v8 }
 0x4d7   :  { %3186 = vmatprep.subr.bf16.mxu0 %v3463_v0  ;;  %2965 = vmatprep.subr.bf16.mxu1 %v3379_v9 }
 0x4da   :  { %2966 = vmatpush3.bf16.msra.mxu1 %v3380_v10 }
 0x4db   :  { %2967 = vmatprep.subr.bf16.mxu1 %v3381_v11 }
 0x4de   :  { %2968 = vmatpush3.bf16.msra.mxu1 %v3382_v12 }
 0x4df   :  { %2984 = vmatprep.subr.bf16.mxu1 %v3387_v42  ;;  %v2754_v42 = vld [vmem:[%s4273_s1 + $0x38] sm:$0xff] }
 0x58c   :  { %v1648_v16 = vpop.f32.mrb[20].mxu0 }
 0x58d   :  { %v1654_v17 = vadd.f32 %v2702_v15, %v1648_v16  ;;  %v3164_v18 = vpop.f32.mrb[21].mxu0  ;;  %v1843_v15 = vpop.permute.xlu1 %1842 }
 0x58e   :  { %v1651_v19 = vpop.f32.mrb[22].mxu0  ;;  %vm1844_vm3 = vcmp.eq.s32.totalorder %v1843_v15, 1 }
 0x58f   :  { %3449 = vtanh.f32 %v1654_v17  ;;  %v3165_v20 = vpop.f32.mrb[23].mxu0  ;;  %vm1845_vm4 = vmpackc.low %vm1844_vm3, %vm1844_vm3 }
 0x594   :  { %v2938_v21 = vpop.f32.mrb[16].mxu1 }
 0x595   :  { %v2939_v23 = vpop.f32.mrb[17].mxu1 }
 0x596   :  { %v2940_v24 = vadd.f32 %v2939_v23, %v2938_v21  ;;  %v2941_v25 = vpop.f32.mrb[18].mxu1  ;;  %v3407_v23 = vld [vmem:[%s4271_s3 + $0x40] sm:$0xff]  }
 0x597   :  { %v2942_v26 = vpop.f32.mrb[19].mxu1  ;;  %v3409_v25 = vld [vmem:[%s4271_s3 + $0x48] sm:$0xff]  }
 0x598   :  { %v1527_v27 = vadd.f32 %v2940_v24, %v4085_v22  ;;  %v3408_v24 = vld [vmem:[%s4271_s3] sm:$0xff]   ;;  %v3410_v26 = vld [vmem:[%s4271_s3 + $0x8] sm:$0xff]  }
 0x599   :  { %v3450_v28 = vpop.eup %3449 }
 0x59a   :  { %v1656_v29 = vpack.c.bf16 %v3450_v28, %v3450_v28  ;;  %3451 = vtanh.f32 %v1527_v27  ;;  %v3411_v27 = vld [vmem:[%s4271_s3 + $0x50] sm:$0xff]  }
 0x59b   :  { %v3412_v28 = vld [vmem:[%s4271_s3 + $0x10] sm:$0xff]  }
 0x59c   :  { %1657 = vst [vmem:[#allocation2] sm:$0xf] %v1656_v29 }
 0x5a3   :  { %v1851_v32 = vld [vmem:[#allocation2] sm:$0xf] }
 0x5a4   :  { %v3452_v33 = vpop.eup %3451  ;;  %3183 = vmatmul.mubr.bf16.vlgmr.msra.gmra.mrb[24].mxu0 %v1851_v32  ;;  %v3416_v32 = vld [vmem:[%s4271_s3 + $0x20] sm:$0xff]  }
 0x5a5   :  { %v1533_v34 = vpack.c.bf16 %v3452_v33, %v3452_v33  ;;  %3187 = vmatpush3.bf16.msra.mxu0 %v3383_v31  ;;  %3202 = vmatprep.mubr.msk.bf16.mxu0 %vm3464_vm0, %v3463_v0  ;;  %v3415_v31 = vld [vmem:[%s4271_s3 + $0x60] sm:$0xff]   ;;  %v3417_v33 = vld [vmem:[%s4271_s3 + $0x68] sm:$0xff]  }
 0x5a6   :  { %3188 = vmatprep.subr.bf16.mxu0 %v3463_v0 }
 0x5a7   :  { %1534 = vst [vmem:[#allocation2 + $0x4] sm:$0xf] %v1533_v34  ;;  %v1544_v37 = vsel %vm1543_vm1, %v1533_v34, %v1537_v36  ;;  %v3418_v34 = vld [vmem:[%s4271_s3 + $0x28] sm:$0xff]   ;;  %v3420_v36 = vld [vmem:[%s4271_s3 + $0x30] sm:$0xff]  }
 0x5a8   :  { %1545 = vst [vmem:[#allocation3] sm:$0xf] %v1544_v37  ;;  %v3421_v37 = vld [vmem:[%s4271_s3 + $0x78] sm:$0xff]  }
 0x5a9   :  { %3189 = vmatpush3.bf16.msra.mxu0 %v3384_v35  ;;  %v3419_v35 = vld [vmem:[%s4271_s3 + $0x70] sm:$0xff]  }
 0x5aa   :  { %3190 = vmatprep.subr.bf16.mxu0 %v3463_v0 }
 0x5ad   :  { %3191 = vmatpush3.bf16.msra.mxu0 %v3385_v40 }
 0x5ae   :  { %v1658_v39 = vld [vmem:[#allocation2 + $0x4] sm:$0xf]  ;;  %3192 = vmatprep.subr.bf16.mxu0 %v3463_v0 }
 0x5af   :  { %1826 = vmatprep.mubr.bf16.mxu1 %v1658_v39  ;;  %v1839_v19 = vld [vmem:[#allocation3] sm:$0xf]  ;;  %v3422_v39 = vld [vmem:[%s4271_s3 + $0x38] sm:$0xff]  }
 0x5b0   :  { %1827 = vmatmul.mubr.bf16.vlgmr.msra.gmra.mrb[20].mxu1 %v1656_v29  ;;  %v3413_v29 = vld [vmem:[%s4271_s3 + $0x58] sm:$0xff]  }
 0x5b1   :  { %3193 = vmatpush3.bf16.msra.mxu0 %v3386_v41  ;;  %2985 = vmatpush3.bf16.msra.mxu1 %v3388_v43  ;;  %v3423_v41 = vld [vmem:[%s4275_s5] sm:$0xff]  }
 0x5b2   :  { %3194 = vmatprep.subr.bf16.mxu0 %v3463_v0  ;;  %2986 = vmatprep.subr.bf16.mxu1 %v3390_v45 }
 0x5b5   :  { %3195 = vmatpush3.bf16.msra.mxu0 %v3389_v44  ;;  %2987 = vmatpush3.bf16.msra.mxu1 %v3391_v46 }
 0x5b6   :  { %3196 = vmatprep.subr.bf16.mxu0 %v3463_v0  ;;  %2988 = vmatprep.subr.bf16.mxu1 %v3393_v48 }
 0x5b9   :  { %3197 = vmatpush3.bf16.msra.mxu0 %v3392_v47  ;;  %2989 = vmatpush3.bf16.msra.mxu1 %v3394_v49 }
 0x5ba   :  { %3198 = vmatprep.subr.bf16.mxu0 %v3463_v0  ;;  %2990 = vmatprep.subr.bf16.mxu1 %v3396_v51 }
 0x5bd   :  { %3199 = vmatpush3.bf16.msra.mxu0 %v3395_v50  ;;  %2991 = vmatpush3.bf16.msra.mxu1 %v3397_v13 }
 0x5be   :  { %3200 = vmatprep.subr.bf16.mxu0 %v3463_v0  ;;  %2992 = vmatprep.subr.bf16.mxu1 %v3399_v53  ;;  %v2145_v53 = vpop.permute.xlu0 %2144 }
 0x5bf   :  { %vm2146_vm5 = vcmp.eq.s32.totalorder %v2145_v53, 1 }
 0x5c0   :  { %vm2147_vm6 = vmpackc.low %vm2146_vm5, %vm2146_vm5 }
 0x5c1   :  { %3201 = vmatpush3.bf16.msra.mxu0 %v3398_v52  ;;  %2993 = vmatpush3.bf16.msra.mxu1 %v3400_v54 }
 0x5c2   :  { %3206 = vmatprep.subr.bf16.mxu0 %v3463_v0  ;;  %2994 = vmatprep.subr.bf16.mxu1 %v3401_v55 }
 0x5c5   :  { %2995 = vmatpush3.bf16.msra.mxu1 %v3402_v56 }
 0x5c6   :  { %2996 = vmatprep.subr.bf16.mxu1 %v3403_v57 }
 0x5c9   :  { %2997 = vmatpush3.bf16.msra.mxu1 %v3404_v58 }
 0x5ca   :  { %2998 = vmatprep.subr.bf16.mxu1 %v3405_v59  ;;  %v3424_v59 = vld [vmem:[%s4275_s5 + $0x8] sm:$0xff]  }
 0x5cd   :  { %2999 = vmatpush3.bf16.msra.mxu1 %v3406_v60  ;;  %v3425_v60 = vld [vmem:[%s4275_s5 + $0x10] sm:$0xff]  }
 0x5ce   :  { %3015 = vmatprep.subr.bf16.mxu1 %v3407_v23 }
 0x677   :  { %v1950_v63 = vpop.f32.mrb[24].mxu0 }
 0x678   :  { %v1956_v1 = vadd.f32 %v2728_v62, %v1950_v63  ;;  %v3184_v3 = vpop.f32.mrb[25].mxu0  ;;  %v3427_v62 = vld [vmem:[%s4275_s5 + $0x20] sm:$0xff]   ;;  %v3428_v63 = vld [vmem:[%s4275_s5 + $0x28] sm:$0xff]  }
 0x679   :  { %v1953_v4 = vpop.f32.mrb[26].mxu0  ;;  %v3430_v3 = vld [vmem:[%s4275_s5 + $0x38] sm:$0xff]  }
 0x67a   :  { %3453 = vtanh.f32 %v1956_v1  ;;  %v3185_v5 = vpop.f32.mrb[27].mxu0  ;;  %v3429_v1 = vld [vmem:[%s4275_s5 + $0x30] sm:$0xff]  }
 0x683   :  { %v2969_v6 = vpop.f32.mrb[20].mxu1 }
 0x684   :  { %v3454_v7 = vpop.eup %3453  ;;  %v2970_v8 = vpop.f32.mrb[21].mxu1 }
 0x685   :  { %v1958_v9 = vpack.c.bf16 %v3454_v7, %v3454_v7  ;;  %v2971_v10 = vadd.f32 %v2970_v8, %v2969_v6  ;;  %v2972_v11 = vpop.f32.mrb[22].mxu1 }
 0x686   :  { %v2973_v12 = vpop.f32.mrb[23].mxu1 }
 0x687   :  { %1959 = vst [vmem:[#allocation2] sm:$0xf] %v1958_v9  ;;  %v1829_v14 = vadd.f32 %v2971_v10, %v4085_v22 }
 0x689   :  { %3455 = vtanh.f32 %v1829_v14 }
 0x68e   :  { %v2153_v16 = vld [vmem:[#allocation2] sm:$0xf] }
 0x68f   :  { %3203 = vmatmul.mubr.bf16.vlgmr.msra.gmra.mrb[28].mxu0 %v2153_v16 }
 0x690   :  { %3222 = vmatprep.mubr.msk.bf16.mxu0 %vm3464_vm0, %v3463_v0  ;;  %vm2442_vm0 = vcmp.eq.s32.totalorder %v3634_v38, 7  ;;  %3207 = vmatpush3.bf16.msra.mxu0 %v3423_v41 }
 0x691   :  { %v2444_v40 = vsel %vm2442_vm0, 1, %v3465_v2  ;;  %3208 = vmatprep.subr.bf16.mxu0 %v3463_v0 }
 0x692   :  { %2446 = vperm.xlu1 %3230, %v2444_v40  }
 0x693   :  { %v3456_v17 = vpop.eup %3455 }
 0x694   :  { %v1835_v18 = vpack.c.bf16 %v3456_v17, %v3456_v17  ;;  %3209 = vmatpush3.bf16.msra.mxu0 %v3424_v59 }
 0x695   :  { %3210 = vmatprep.subr.bf16.mxu0 %v3463_v0 }
 0x696   :  { %1836 = vst [vmem:[#allocation2 + $0x4] sm:$0xf] %v1835_v18  ;;  %v1846_v20 = vsel %vm1845_vm4, %v1835_v18, %v1839_v19 }
 0x697   :  { %1847 = vst [vmem:[#allocation3] sm:$0xf] %v1846_v20 }
 0x698   :  { %3211 = vmatpush3.bf16.msra.mxu0 %v3425_v60 }
 0x699   :  { %3212 = vmatprep.subr.bf16.mxu0 %v3463_v0 }
 0x69c   :  { %3213 = vmatpush3.bf16.msra.mxu0 %v3426_v61 }
 0x69d   :  { %v1960_v21 = vld [vmem:[#allocation2 + $0x4] sm:$0xf]  ;;  %3214 = vmatprep.subr.bf16.mxu0 %v3463_v0 }
 0x69e   :  { %2128 = vmatprep.mubr.bf16.mxu1 %v1960_v21  ;;  %v2141_v56 = vld [vmem:[#allocation3] sm:$0xf] }
 0x69f   :  { %2129 = vmatmul.mubr.bf16.vlgmr.msra.gmra.mrb[24].mxu1 %v1958_v9 }
 0x6a0   :  { %3016 = vmatpush3.bf16.msra.mxu1 %v3408_v24  ;;  %3215 = vmatpush3.bf16.msra.mxu0 %v3427_v62 }
 0x6a1   :  { %3017 = vmatprep.subr.bf16.mxu1 %v3409_v25  ;;  %3216 = vmatprep.subr.bf16.mxu0 %v3463_v0 }
 0x6a4   :  { %3018 = vmatpush3.bf16.msra.mxu1 %v3410_v26  ;;  %3217 = vmatpush3.bf16.msra.mxu0 %v3428_v63 }
 0x6a5   :  { %3019 = vmatprep.subr.bf16.mxu1 %v3411_v27  ;;  %3218 = vmatprep.subr.bf16.mxu0 %v3463_v0 }
 0x6a8   :  { %3020 = vmatpush3.bf16.msra.mxu1 %v3412_v28  ;;  %3219 = vmatpush3.bf16.msra.mxu0 %v3429_v1 }
 0x6a9   :  { %3021 = vmatprep.subr.bf16.mxu1 %v3413_v29  ;;  %3220 = vmatprep.subr.bf16.mxu0 %v3463_v0  ;;  %v2780_v0 = vld [vmem:[%s4276_s6] ss:$0 sm:$0xff] }
 0x6ac   :  { %3022 = vmatpush3.bf16.msra.mxu1 %v3414_v30  ;;  %3221 = vmatpush3.bf16.msra.mxu0 %v3430_v3 }
 0x6ad   :  { %3023 = vmatprep.subr.bf16.mxu1 %v3415_v31 }
 0x6b0   :  { %3024 = vmatpush3.bf16.msra.mxu1 %v3416_v32 }
 0x6b1   :  { %3025 = vmatprep.subr.bf16.mxu1 %v3417_v33 }
 0x6b4   :  { %3026 = vmatpush3.bf16.msra.mxu1 %v3418_v34 }
 0x6b5   :  { %3027 = vmatprep.subr.bf16.mxu1 %v3419_v35 }
 0x6b8   :  { %3028 = vmatpush3.bf16.msra.mxu1 %v3420_v36 }
 0x6b9   :  { %3029 = vmatprep.subr.bf16.mxu1 %v3421_v37 }
 0x6bc   :  { %3030 = vmatpush3.bf16.msra.mxu1 %v3422_v39 }
 0x711   :  { %v2447_v10 = vpop.permute.xlu1 %2446 }
 0x712   :  { %vm2448_vm7 = vcmp.eq.s32.totalorder %v2447_v10, 1 }
 0x713   :  { %vm2449_vm8 = vmpackc.low %vm2448_vm7, %vm2448_vm7 }
 0x762   :  { %v2252_v43 = vpop.f32.mrb[28].mxu0 }
 0x763   :  { %v2258_v44 = vadd.f32 %v2754_v42, %v2252_v43  ;;  %v3204_v45 = vpop.f32.mrb[29].mxu0 }
 0x764   :  { %v2255_v46 = vpop.f32.mrb[30].mxu0 }
 0x765   :  { %3457 = vtanh.f32 %v2258_v44  ;;  %v3205_v38 = vpop.f32.mrb[31].mxu0 }
 0x76f   :  { %v3458_v47 = vpop.eup %3457 }
 0x770   :  { %v2260_v2 = vpack.c.bf16 %v3458_v47, %v3458_v47 }
 0x772   :  { %2261 = vst [vmem:[#allocation2] sm:$0xf] %v2260_v2  ;;  %v3000_v48 = vpop.f32.mrb[24].mxu1 }
 0x773   :  { %v3001_v49 = vpop.f32.mrb[25].mxu1 }
 0x774   :  { %v3002_v50 = vadd.f32 %v3001_v49, %v3000_v48  ;;  %v3003_v51 = vpop.f32.mrb[26].mxu1 }
 0x775   :  { %v3004_v13 = vpop.f32.mrb[27].mxu1 }
 0x776   :  { %v2131_v52 = vadd.f32 %v3002_v50, %v4085_v22 }
 0x778   :  { %3459 = vtanh.f32 %v2131_v52 }
 0x782   :  { %v3460_v54 = vpop.eup %3459 }
 0x783   :  { %v2137_v55 = vpack.c.bf16 %v3460_v54, %v3460_v54 }
 0x785   :  { %2138 = vst [vmem:[#allocation2 + $0x4] sm:$0xf] %v2137_v55  ;;  %v2148_v57 = vsel %vm2147_vm6, %v2137_v55, %v2141_v56 }
 0x786   :  { %2149 = vst [vmem:[#allocation3] sm:$0xf] %v2148_v57 }
 0x78c   :  { %v2262_v58 = vld [vmem:[#allocation2 + $0x4] sm:$0xf] }
 0x78d   :  { %2430 = vmatprep.mubr.bf16.mxu1 %v2262_v58  ;;  %v2443_v14 = vld [vmem:[#allocation3] sm:$0xf] }
 0x78e   :  { %2431 = vmatmul.mubr.bf16.vlgmr.msra.gmra.mrb[28].mxu1 %v2260_v2 }
 0x861   :  { %v3031_v4 = vpop.f32.mrb[28].mxu1 }
 0x862   :  { %v3032_v5 = vpop.f32.mrb[29].mxu1 }
 0x863   :  { %v3033_v6 = vadd.f32 %v3032_v5, %v3031_v4  ;;  %v3034_v7 = vpop.f32.mrb[30].mxu1 }
 0x864   :  { %v3035_v8 = vpop.f32.mrb[31].mxu1 }
 0x865   :  { %v2433_v9 = vadd.f32 %v3033_v6, %v4085_v22 }
 0x867   :  { %3461 = vtanh.f32 %v2433_v9 }
 0x871   :  { %v3462_v11 = vpop.eup %3461 }
 0x872   :  { %v2439_v12 = vpack.c.bf16 %v3462_v11, %v3462_v11 }
 0x874   :  { %2440 = vst [vmem:[#allocation2 + $0x4] sm:$0xf] %v2439_v12  ;;  %v2450_v15 = vsel %vm2449_vm8, %v2439_v12, %v2443_v14 }
 0x875   :  { %2451 = vst [vmem:[#allocation3] sm:$0xf] %v2450_v15 }
 0x87c   :  { %v2455_v16 = vld [vmem:[#allocation3] sm:$0xf] }
 0x87d   :  { %3223 = vmatmul.mubr.bf16.vlgmr.msra.gmra.mrb[32].mxu0 %v2455_v16 }
 0x950   :  { %v2561_v17 = vpop.f32.mrb[32].mxu0 }
 0x951   :  { %v2562_v18 = vadd.f32 %v2780_v0, %v2561_v17  ;;  %v3224_v19 = vpop.f32.mrb[33].mxu0 }
 0x952   :  { %v2564_v22 = vpop.f32.mrb[34].mxu0 }
 0x953   :  { %2567 = vst [vmem:[%s4277_s7] sm:$0xff] %v2562_v18  ;;  %v3225_v20 = vpop.f32.mrb[35].mxu0 }

</bundles_post_ra>
